<compile_context>
chip_gen: v5e
topology: v5e:2x2
jax: 0.10.0
libtpu: 0.0.40
codegen_flags: <defaults>
</compile_context>

<pallas_src>
import functools

import jax
import jax.numpy as jnp
from jax.experimental import pallas as pl
from jax.experimental.pallas import tpu as pltpu


_LN_EPS = 1e-5
_VMEM_LIMIT = 64 * 1024 * 1024      # roomy for v5e/v6e; demo usage is tiny
_MATMUL_DTYPE = jnp.bfloat16        # MXU-native operand dtype


# ----------------------------------------------------------------------------
# In-kernel helpers (pure jnp, traced inside pallas kernels).
# ----------------------------------------------------------------------------
def _layernorm(x, gamma, beta, eps=_LN_EPS):
    mu = jnp.mean(x, axis=-1, keepdims=True)
    xc = x - mu
    var = jnp.mean(xc * xc, axis=-1, keepdims=True)
    return xc * jax.lax.rsqrt(var + eps) * gamma + beta


def _gelu(x):
    # TODO(synk): PyTorch nn.GELU defaults to the exact erf form; the tanh
    # approximation is used here (no guaranteed erf lowering in Mosaic).
    c = 0.7978845608028654  # sqrt(2/pi)
    return 0.5 * x * (1.0 + jnp.tanh(c * (x + 0.044715 * x * x * x)))


# ----------------------------------------------------------------------------
# Fused per-layer kernel:
#   PreNorm+Attention+residual, PreNorm+FFN+residual, (optional) final LN.
# One grid step processes a (Bt, N, D) slab of batch elements.
# ----------------------------------------------------------------------------
def _fused_layer_kernel(x_ref,
                        ln1_g_ref, ln1_b_ref, wqkv_ref, wo_ref, bo_ref,
                        ln2_g_ref, ln2_b_ref, w1_ref, b1_ref, w2_ref, b2_ref,
                        fin_g_ref, fin_b_ref,
                        o_ref, *, heads, dim_head, scale, apply_final_ln):
    bt, n, d = x_ref.shape
    inner = heads * dim_head
    bf16 = _MATMUL_DTYPE

    x = x_ref[...].astype(jnp.float32).reshape(bt * n, d)    # (Bt*N, D)

    # ---------------- PreNorm + Attention + residual ------------------------
    y = _layernorm(x, ln1_g_ref[...], ln1_b_ref[...])
    qkv = jnp.dot(y.astype(bf16), wqkv_ref[...],
                  preferred_element_type=jnp.float32)        # (Bt*N, 3*inner)
    q = qkv[:, 0 * inner:1 * inner].reshape(bt, n, inner)
    k = qkv[:, 1 * inner:2 * inner].reshape(bt, n, inner)
    v = qkv[:, 2 * inner:3 * inner].reshape(bt, n, inner)

    proj = jnp.zeros((bt * n, d), jnp.float32)
    for h in range(heads):                                   # static unroll
        sl = slice(h * dim_head, (h + 1) * dim_head)
        qh = q[:, :, sl].astype(bf16)                        # (Bt, N, dh)
        kh = k[:, :, sl].astype(bf16)
        vh = v[:, :, sl].astype(bf16)
        s = jnp.einsum('bnd,bmd->bnm', qh, kh,
                       preferred_element_type=jnp.float32) * scale
        s = s - jnp.max(s, axis=-1, keepdims=True)
        p = jnp.exp(s)
        attn = p * pl.reciprocal(jnp.sum(p, axis=-1, keepdims=True),
                                 approx=True)
        oh = jnp.einsum('bnm,bmd->bnd', attn.astype(bf16), vh,
                        preferred_element_type=jnp.float32)  # (Bt, N, dh)
        # Accumulate the output projection per head (no lane-concatenate).
        proj = proj + jnp.dot(oh.reshape(bt * n, dim_head).astype(bf16),
                              wo_ref[sl, :],
                              preferred_element_type=jnp.float32)

    x1 = proj + bo_ref[...] + x                              # residual (f32)

    # ---------------- PreNorm + FeedForward + residual ----------------------
    y2 = _layernorm(x1, ln2_g_ref[...], ln2_b_ref[...])
    hid = _gelu(jnp.dot(y2.astype(bf16), w1_ref[...],
                        preferred_element_type=jnp.float32) + b1_ref[...])
    z = jnp.dot(hid.astype(bf16), w2_ref[...],
                preferred_element_type=jnp.float32) + b2_ref[...]
    x2 = z + x1                                              # residual (f32)

    # ---------------- Final LayerNorm fused into the last layer -------------
    if apply_final_ln:
        x2 = _layernorm(x2, fin_g_ref[...], fin_b_ref[...])

    o_ref[...] = x2.reshape(bt, n, d).astype(o_ref.dtype)


def _pick_batch_tile(batch, seqlen, target_rows=512):
    """Largest divisor of `batch` keeping Bt*N rows near `target_rows`."""
    bt = max(1, min(batch, target_rows // max(seqlen, 1)))
    while batch % bt:
        bt -= 1
    return bt


def fused_transformer_layer(x, p, norm_g, norm_b, *, heads, dim_head,
                            apply_final_ln, batch_tile):
    B, N, D = x.shape
    bt = batch_tile
    kernel = functools.partial(
        _fused_layer_kernel, heads=heads, dim_head=dim_head,
        scale=dim_head ** -0.5, apply_final_ln=apply_final_ln)

    def rep(arr):
        shp = tuple(arr.shape)
        return pl.BlockSpec(shp, lambda i, _s=shp: (0,) * len(_s))

    return pl.pallas_call(
        kernel,
        out_shape=jax.ShapeDtypeStruct((B, N, D), x.dtype),
        grid_spec=pltpu.PrefetchScalarGridSpec(
            num_scalar_prefetch=0,
            grid=(B // bt,),
            in_specs=[
                pl.BlockSpec((bt, N, D), lambda i: (i, 0, 0)),   # x slab
                rep(p['ln1_g']), rep(p['ln1_b']),                # LN1
                rep(p['w_qkv']), rep(p['w_out']), rep(p['b_out']),
                rep(p['ln2_g']), rep(p['ln2_b']),                # LN2
                rep(p['w1']), rep(p['b1']), rep(p['w2']), rep(p['b2']),
                rep(norm_g), rep(norm_b),                        # final LN
            ],
            out_specs=pl.BlockSpec((bt, N, D), lambda i: (i, 0, 0)),
        ),
        compiler_params=pltpu.CompilerParams(
            dimension_semantics=("parallel",),
            vmem_limit_bytes=_VMEM_LIMIT,
        ),
    )(x, p['ln1_g'], p['ln1_b'], p['w_qkv'], p['w_out'], p['b_out'],
      p['ln2_g'], p['ln2_b'], p['w1'], p['b1'], p['w2'], p['b2'],
      norm_g, norm_b)


# ----------------------------------------------------------------------------
# Transformer module (mirrors the PyTorch module; dropout = 0 -> identity).
# Weights stored bf16 (MXU operands), LN params / biases in f32.
# ----------------------------------------------------------------------------
class Transformer:
    def __init__(self, dim, depth, heads, dim_head, mlp_dim, key,
                 dtype=jnp.float32):
        self.heads, self.dim_head = heads, dim_head
        inner = heads * dim_head
        wdt = _MATMUL_DTYPE
        keys = jax.random.split(key, depth * 11 + 2)
        self.layers = []
        for l in range(depth):
            kk = keys[11 * l: 11 * (l + 1)]
            self.layers.append(dict(
                ln1_g=1.0 + 0.1 * jax.random.normal(kk[0], (1, dim), dtype),
                ln1_b=0.05 * jax.random.normal(kk[1], (1, dim), dtype),
                w_qkv=(0.05 * jax.random.normal(kk[2], (dim, 3 * inner),
                                                dtype)).astype(wdt),
                w_out=(0.05 * jax.random.normal(kk[3], (inner, dim),
                                                dtype)).astype(wdt),
                b_out=0.02 * jax.random.normal(kk[4], (1, dim), dtype),
                ln2_g=1.0 + 0.1 * jax.random.normal(kk[5], (1, dim), dtype),
                ln2_b=0.05 * jax.random.normal(kk[6], (1, dim), dtype),
                w1=(0.05 * jax.random.normal(kk[7], (dim, mlp_dim),
                                             dtype)).astype(wdt),
                b1=0.02 * jax.random.normal(kk[8], (1, mlp_dim), dtype),
                w2=(0.05 * jax.random.normal(kk[9], (mlp_dim, dim),
                                             dtype)).astype(wdt),
                b2=0.02 * jax.random.normal(kk[10], (1, dim), dtype),
            ))
        self.norm_g = 1.0 + 0.1 * jax.random.normal(keys[-2], (1, dim), dtype)
        self.norm_b = 0.05 * jax.random.normal(keys[-1], (1, dim), dtype)

    def __call__(self, x):
        if not self.layers:
            # TODO(synk): depth == 0 degenerates to a lone LayerNorm; plain jnp.
            return _layernorm(x, self.norm_g, self.norm_b).astype(x.dtype)
        B, N, _ = x.shape
        bt = _pick_batch_tile(B, N)
        depth = len(self.layers)
        for li, p in enumerate(self.layers):
            x = fused_transformer_layer(
                x, p, self.norm_g, self.norm_b,
                heads=self.heads, dim_head=self.dim_head,
                apply_final_ln=(li == depth - 1), batch_tile=bt)
        return x


# ----------------------------------------------------------------------------
# Plain-JAX reference (same math, same bf16 matmul policy, same GELU approx).
# ----------------------------------------------------------------------------
def reference_transformer(x, model):
    bf16 = _MATMUL_DTYPE

    def ln(t, g, b):
        mu = t.mean(-1, keepdims=True)
        var = ((t - mu) ** 2).mean(-1, keepdims=True)
        return (t - mu) / jnp.sqrt(var + _LN_EPS) * g + b

    def mm(a, w):
        return jnp.dot(a.astype(bf16), w.astype(bf16),
                       preferred_element_type=jnp.float32)

    heads, dh = model.heads, model.dim_head
    inner = heads * dh
    B, N, _ = x.shape
    scale = dh ** -0.5
    for p in model.layers:
        y = ln(x, p['ln1_g'], p['ln1_b'])
        qkv = mm(y, p['w_qkv'])
        q, k, v = (t.reshape(B, N, heads, dh).transpose(0, 2, 1, 3)
                   for t in (qkv[..., :inner], qkv[..., inner:2 * inner],
                             qkv[..., 2 * inner:]))
        dots = jnp.einsum('bhid,bhjd->bhij', q.astype(bf16), k.astype(bf16),
                          preferred_element_type=jnp.float32) * scale
        attn = jax.nn.softmax(dots, axis=-1)
        o = jnp.einsum('bhij,bhjd->bhid', attn.astype(bf16), v.astype(bf16),
                       preferred_element_type=jnp.float32)
        o = o.transpose(0, 2, 1, 3).reshape(B, N, inner)
        x = mm(o, p['w_out']) + p['b_out'] + x
        y = ln(x, p['ln2_g'], p['ln2_b'])
        x = mm(_gelu(mm(y, p['w1']) + p['b1']), p['w2']) + p['b2'] + x
    return ln(x, model.norm_g, model.norm_b)


# ----------------------------------------------------------------------------
# Demo / correctness check.
# ----------------------------------------------------------------------------
if __name__ == "__main__":
    B, N = 2, 16
    dim, depth, heads, dim_head, mlp_dim = 128, 2, 2, 128, 256

    key = jax.random.PRNGKey(0)
    k_model, k_x = jax.random.split(key)
    model = Transformer(dim, depth, heads, dim_head, mlp_dim, k_model)
    x = jax.random.normal(k_x, (B, N, dim), dtype=jnp.float32)

    out = jax.block_until_ready(model(x))
    ref = jax.block_until_ready(reference_transformer(x, model))

    assert out.shape == (B, N, dim)
    assert out.dtype == x.dtype
    err = float(jnp.max(jnp.abs(out - ref)))
    assert jnp.allclose(out, ref, atol=2e-2, rtol=2e-2), f"max abs err {err}"

    print("KERNEL_OK")
</pallas_src>

<mosaic_0001>
module attributes {stable_mosaic.version = 11 : i64} {
  func.func @_fused_layer_kernel(%arg0: i32, %arg1: memref<2x16x128xf32, #tpu.memory_space<vmem>>, %arg2: memref<1x128xf32, #tpu.memory_space<vmem>>, %arg3: memref<1x128xf32, #tpu.memory_space<vmem>>, %arg4: memref<128x768xbf16, #tpu.memory_space<vmem>>, %arg5: memref<256x128xbf16, #tpu.memory_space<vmem>>, %arg6: memref<1x128xf32, #tpu.memory_space<vmem>>, %arg7: memref<1x128xf32, #tpu.memory_space<vmem>>, %arg8: memref<1x128xf32, #tpu.memory_space<vmem>>, %arg9: memref<128x256xbf16, #tpu.memory_space<vmem>>, %arg10: memref<1x256xf32, #tpu.memory_space<vmem>>, %arg11: memref<256x128xbf16, #tpu.memory_space<vmem>>, %arg12: memref<1x128xf32, #tpu.memory_space<vmem>>, %arg13: memref<1x128xf32, #tpu.memory_space<vmem>>, %arg14: memref<1x128xf32, #tpu.memory_space<vmem>>, %arg15: memref<2x16x128xf32, #tpu.memory_space<vmem>>) attributes {dimension_semantics = [#tpu.dimension_semantics<parallel>], iteration_bounds = array<i64: 1>, scalar_prefetch = 0 : i64, scratch_operands = 0 : i64, tpu.core_type = #tpu.core_type<tc>, window_params = [{transform_indices = @transform_0, window_bounds = array<i64: 2, 16, 128>}, {pipeline_mode = #tpu.pipeline_mode<synchronous>, transform_indices = @transform_1, window_bounds = array<i64: 1, 128>}, {pipeline_mode = #tpu.pipeline_mode<synchronous>, transform_indices = @transform_2, window_bounds = array<i64: 1, 128>}, {pipeline_mode = #tpu.pipeline_mode<synchronous>, transform_indices = @transform_3, window_bounds = array<i64: 128, 768>}, {pipeline_mode = #tpu.pipeline_mode<synchronous>, transform_indices = @transform_4, window_bounds = array<i64: 256, 128>}, {pipeline_mode = #tpu.pipeline_mode<synchronous>, transform_indices = @transform_5, window_bounds = array<i64: 1, 128>}, {pipeline_mode = #tpu.pipeline_mode<synchronous>, transform_indices = @transform_6, window_bounds = array<i64: 1, 128>}, {pipeline_mode = #tpu.pipeline_mode<synchronous>, transform_indices = @transform_7, window_bounds = array<i64: 1, 128>}, {pipeline_mode = #tpu.pipeline_mode<synchronous>, transform_indices = @transform_8, window_bounds = array<i64: 128, 256>}, {pipeline_mode = #tpu.pipeline_mode<synchronous>, transform_indices = @transform_9, window_bounds = array<i64: 1, 256>}, {pipeline_mode = #tpu.pipeline_mode<synchronous>, transform_indices = @transform_10, window_bounds = array<i64: 256, 128>}, {pipeline_mode = #tpu.pipeline_mode<synchronous>, transform_indices = @transform_11, window_bounds = array<i64: 1, 128>}, {pipeline_mode = #tpu.pipeline_mode<synchronous>, transform_indices = @transform_12, window_bounds = array<i64: 1, 128>}, {pipeline_mode = #tpu.pipeline_mode<synchronous>, transform_indices = @transform_13, window_bounds = array<i64: 1, 128>}, {transform_indices = @transform_14, window_bounds = array<i64: 2, 16, 128>}]} {
    %c0 = arith.constant 0 : index
    %c0_0 = arith.constant 0 : index
    %c0_1 = arith.constant 0 : index
    %0 = vector.load %arg1[%c0, %c0_0, %c0_1] : memref<2x16x128xf32, #tpu.memory_space<vmem>>, vector<2x16x128xf32>
    %1 = vector.shape_cast %0 : vector<2x16x128xf32> to vector<32x128xf32>
    %c0_2 = arith.constant 0 : index
    %c0_3 = arith.constant 0 : index
    %2 = vector.load %arg2[%c0_2, %c0_3] : memref<1x128xf32, #tpu.memory_space<vmem>>, vector<1x128xf32>
    %c0_4 = arith.constant 0 : index
    %c0_5 = arith.constant 0 : index
    %3 = vector.load %arg3[%c0_4, %c0_5] : memref<1x128xf32, #tpu.memory_space<vmem>>, vector<1x128xf32>
    %cst = arith.constant dense<0.000000e+00> : vector<32xf32>
    %4 = vector.multi_reduction <add>, %1, %cst [1] : vector<32x128xf32> to vector<32xf32>
    %5 = vector.shape_cast %4 : vector<32xf32> to vector<32x1xf32>
    %cst_6 = arith.constant 1.280000e+02 : f32
    %6 = vector.broadcast %cst_6 : f32 to vector<32x1xf32>
    %7 = arith.divf %5, %6 : vector<32x1xf32>
    %8 = vector.broadcast %7 : vector<32x1xf32> to vector<32x128xf32>
    %9 = arith.subf %1, %8 : vector<32x128xf32>
    %10 = arith.mulf %9, %9 : vector<32x128xf32>
    %cst_7 = arith.constant dense<0.000000e+00> : vector<32xf32>
    %11 = vector.multi_reduction <add>, %10, %cst_7 [1] : vector<32x128xf32> to vector<32xf32>
    %12 = vector.shape_cast %11 : vector<32xf32> to vector<32x1xf32>
    %cst_8 = arith.constant 1.280000e+02 : f32
    %13 = vector.broadcast %cst_8 : f32 to vector<32x1xf32>
    %14 = arith.divf %12, %13 : vector<32x1xf32>
    %cst_9 = arith.constant 9.99999974E-6 : f32
    %15 = vector.broadcast %cst_9 : f32 to vector<32x1xf32>
    %16 = arith.addf %14, %15 : vector<32x1xf32>
    %17 = math.rsqrt %16 : vector<32x1xf32>
    %18 = vector.broadcast %17 : vector<32x1xf32> to vector<32x128xf32>
    %19 = arith.mulf %9, %18 : vector<32x128xf32>
    %20 = vector.broadcast %2 : vector<1x128xf32> to vector<32x128xf32>
    %21 = arith.mulf %19, %20 : vector<32x128xf32>
    %22 = vector.broadcast %3 : vector<1x128xf32> to vector<32x128xf32>
    %23 = arith.addf %21, %22 : vector<32x128xf32>
    %24 = arith.truncf %23 : vector<32x128xf32> to vector<32x128xbf16>
    %c0_10 = arith.constant 0 : index
    %c0_11 = arith.constant 0 : index
    %25 = vector.load %arg4[%c0_10, %c0_11] : memref<128x768xbf16, #tpu.memory_space<vmem>>, vector<128x768xbf16>
    %cst_12 = arith.constant dense<0.000000e+00> : vector<32x768xf32>
    %26 = tpu.matmul %24, %25, %cst_12 {dimension_numbers = #tpu.dot_dimension_numbers<[1], [0], [0], [1], [0, 0, 1, 1], [], []>} : vector<32x128xbf16>, vector<128x768xbf16>, vector<32x768xf32> -> vector<32x768xf32>
    %27 = vector.extract_strided_slice %26 {offsets = [0, 0], sizes = [32, 256], strides = [1, 1]} : vector<32x768xf32> to vector<32x256xf32>
    %28 = vector.shape_cast %27 : vector<32x256xf32> to vector<2x16x256xf32>
    %29 = vector.extract_strided_slice %26 {offsets = [0, 256], sizes = [32, 256], strides = [1, 1]} : vector<32x768xf32> to vector<32x256xf32>
    %30 = vector.shape_cast %29 : vector<32x256xf32> to vector<2x16x256xf32>
    %31 = vector.extract_strided_slice %26 {offsets = [0, 512], sizes = [32, 256], strides = [1, 1]} : vector<32x768xf32> to vector<32x256xf32>
    %32 = vector.shape_cast %31 : vector<32x256xf32> to vector<2x16x256xf32>
    %cst_13 = arith.constant 0.000000e+00 : f32
    %33 = vector.broadcast %cst_13 : f32 to vector<32x128xf32>
    %34 = vector.extract_strided_slice %28 {offsets = [0, 0, 0], sizes = [2, 16, 128], strides = [1, 1, 1]} : vector<2x16x256xf32> to vector<2x16x128xf32>
    %35 = arith.truncf %34 : vector<2x16x128xf32> to vector<2x16x128xbf16>
    %36 = vector.extract_strided_slice %30 {offsets = [0, 0, 0], sizes = [2, 16, 128], strides = [1, 1, 1]} : vector<2x16x256xf32> to vector<2x16x128xf32>
    %37 = arith.truncf %36 : vector<2x16x128xf32> to vector<2x16x128xbf16>
    %38 = vector.extract_strided_slice %32 {offsets = [0, 0, 0], sizes = [2, 16, 128], strides = [1, 1, 1]} : vector<2x16x256xf32> to vector<2x16x128xf32>
    %39 = arith.truncf %38 : vector<2x16x128xf32> to vector<2x16x128xbf16>
    "tpu.trace_start"() <{level = 10 : i32, message = "bnd,bmd->bnm"}> : () -> ()
    %cst_14 = arith.constant dense<0.000000e+00> : vector<2x16x16xf32>
    %40 = tpu.matmul %35, %37, %cst_14 {dimension_numbers = #tpu.dot_dimension_numbers<[2], [2], [1], [1], [0, 0, 0, 1, 1, 1], [0], [0]>} : vector<2x16x128xbf16>, vector<2x16x128xbf16>, vector<2x16x16xf32> -> vector<2x16x16xf32>
    "tpu.trace_stop"() : () -> ()
    %cst_15 = arith.constant 0.0883883461 : f32
    %41 = vector.broadcast %cst_15 : f32 to vector<2x16x16xf32>
    %42 = arith.mulf %40, %41 : vector<2x16x16xf32>
    %cst_16 = arith.constant dense<0xFF800000> : vector<2x16xf32>
    %43 = vector.multi_reduction <maximumf>, %42, %cst_16 [2] : vector<2x16x16xf32> to vector<2x16xf32>
    %44 = vector.shape_cast %43 : vector<2x16xf32> to vector<2x16x1xf32>
    %45 = vector.broadcast %44 : vector<2x16x1xf32> to vector<2x16x16xf32>
    %46 = arith.subf %42, %45 : vector<2x16x16xf32>
    %47 = math.exp %46 : vector<2x16x16xf32>
    %cst_17 = arith.constant dense<0.000000e+00> : vector<2x16xf32>
    %48 = vector.multi_reduction <add>, %47, %cst_17 [2] : vector<2x16x16xf32> to vector<2x16xf32>
    %49 = vector.shape_cast %48 : vector<2x16xf32> to vector<2x16x1xf32>
    %50 = tpu.reciprocal %49 {approx = true} : vector<2x16x1xf32> -> vector<2x16x1xf32>
    %51 = vector.broadcast %50 : vector<2x16x1xf32> to vector<2x16x16xf32>
    %52 = arith.mulf %47, %51 : vector<2x16x16xf32>
    %53 = arith.truncf %52 : vector<2x16x16xf32> to vector<2x16x16xbf16>
    "tpu.trace_start"() <{level = 10 : i32, message = "bnm,bmd->bnd"}> : () -> ()
    %cst_18 = arith.constant dense<0.000000e+00> : vector<2x16x128xf32>
    %54 = tpu.matmul %53, %39, %cst_18 {dimension_numbers = #tpu.dot_dimension_numbers<[2], [1], [1], [2], [0, 0, 0, 1, 1, 2], [0], [0]>} : vector<2x16x16xbf16>, vector<2x16x128xbf16>, vector<2x16x128xf32> -> vector<2x16x128xf32>
    "tpu.trace_stop"() : () -> ()
    %55 = vector.shape_cast %54 : vector<2x16x128xf32> to vector<32x128xf32>
    %56 = arith.truncf %55 : vector<32x128xf32> to vector<32x128xbf16>
    %c0_19 = arith.constant 0 : index
    %c0_20 = arith.constant 0 : index
    %57 = vector.load %arg5[%c0_19, %c0_20] : memref<256x128xbf16, #tpu.memory_space<vmem>>, vector<128x128xbf16>
    %cst_21 = arith.constant dense<0.000000e+00> : vector<32x128xf32>
    %58 = tpu.matmul %56, %57, %cst_21 {dimension_numbers = #tpu.dot_dimension_numbers<[1], [0], [0], [1], [0, 0, 1, 1], [], []>} : vector<32x128xbf16>, vector<128x128xbf16>, vector<32x128xf32> -> vector<32x128xf32>
    %59 = arith.addf %33, %58 : vector<32x128xf32>
    %60 = vector.extract_strided_slice %28 {offsets = [0, 0, 128], sizes = [2, 16, 128], strides = [1, 1, 1]} : vector<2x16x256xf32> to vector<2x16x128xf32>
    %61 = arith.truncf %60 : vector<2x16x128xf32> to vector<2x16x128xbf16>
    %62 = vector.extract_strided_slice %30 {offsets = [0, 0, 128], sizes = [2, 16, 128], strides = [1, 1, 1]} : vector<2x16x256xf32> to vector<2x16x128xf32>
    %63 = arith.truncf %62 : vector<2x16x128xf32> to vector<2x16x128xbf16>
    %64 = vector.extract_strided_slice %32 {offsets = [0, 0, 128], sizes = [2, 16, 128], strides = [1, 1, 1]} : vector<2x16x256xf32> to vector<2x16x128xf32>
    %65 = arith.truncf %64 : vector<2x16x128xf32> to vector<2x16x128xbf16>
    "tpu.trace_start"() <{level = 10 : i32, message = "bnd,bmd->bnm"}> : () -> ()
    %cst_22 = arith.constant dense<0.000000e+00> : vector<2x16x16xf32>
    %66 = tpu.matmul %61, %63, %cst_22 {dimension_numbers = #tpu.dot_dimension_numbers<[2], [2], [1], [1], [0, 0, 0, 1, 1, 1], [0], [0]>} : vector<2x16x128xbf16>, vector<2x16x128xbf16>, vector<2x16x16xf32> -> vector<2x16x16xf32>
    "tpu.trace_stop"() : () -> ()
    %cst_23 = arith.constant 0.0883883461 : f32
    %67 = vector.broadcast %cst_23 : f32 to vector<2x16x16xf32>
    %68 = arith.mulf %66, %67 : vector<2x16x16xf32>
    %cst_24 = arith.constant dense<0xFF800000> : vector<2x16xf32>
    %69 = vector.multi_reduction <maximumf>, %68, %cst_24 [2] : vector<2x16x16xf32> to vector<2x16xf32>
    %70 = vector.shape_cast %69 : vector<2x16xf32> to vector<2x16x1xf32>
    %71 = vector.broadcast %70 : vector<2x16x1xf32> to vector<2x16x16xf32>
    %72 = arith.subf %68, %71 : vector<2x16x16xf32>
    %73 = math.exp %72 : vector<2x16x16xf32>
    %cst_25 = arith.constant dense<0.000000e+00> : vector<2x16xf32>
    %74 = vector.multi_reduction <add>, %73, %cst_25 [2] : vector<2x16x16xf32> to vector<2x16xf32>
    %75 = vector.shape_cast %74 : vector<2x16xf32> to vector<2x16x1xf32>
    %76 = tpu.reciprocal %75 {approx = true} : vector<2x16x1xf32> -> vector<2x16x1xf32>
    %77 = vector.broadcast %76 : vector<2x16x1xf32> to vector<2x16x16xf32>
    %78 = arith.mulf %73, %77 : vector<2x16x16xf32>
    %79 = arith.truncf %78 : vector<2x16x16xf32> to vector<2x16x16xbf16>
    "tpu.trace_start"() <{level = 10 : i32, message = "bnm,bmd->bnd"}> : () -> ()
    %cst_26 = arith.constant dense<0.000000e+00> : vector<2x16x128xf32>
    %80 = tpu.matmul %79, %65, %cst_26 {dimension_numbers = #tpu.dot_dimension_numbers<[2], [1], [1], [2], [0, 0, 0, 1, 1, 2], [0], [0]>} : vector<2x16x16xbf16>, vector<2x16x128xbf16>, vector<2x16x128xf32> -> vector<2x16x128xf32>
    "tpu.trace_stop"() : () -> ()
    %81 = vector.shape_cast %80 : vector<2x16x128xf32> to vector<32x128xf32>
    %82 = arith.truncf %81 : vector<32x128xf32> to vector<32x128xbf16>
    %c128 = arith.constant 128 : index
    %c0_27 = arith.constant 0 : index
    %83 = vector.load %arg5[%c128, %c0_27] : memref<256x128xbf16, #tpu.memory_space<vmem>>, vector<128x128xbf16>
    %cst_28 = arith.constant dense<0.000000e+00> : vector<32x128xf32>
    %84 = tpu.matmul %82, %83, %cst_28 {dimension_numbers = #tpu.dot_dimension_numbers<[1], [0], [0], [1], [0, 0, 1, 1], [], []>} : vector<32x128xbf16>, vector<128x128xbf16>, vector<32x128xf32> -> vector<32x128xf32>
    %85 = arith.addf %59, %84 : vector<32x128xf32>
    %c0_29 = arith.constant 0 : index
    %c0_30 = arith.constant 0 : index
    %86 = vector.load %arg6[%c0_29, %c0_30] : memref<1x128xf32, #tpu.memory_space<vmem>>, vector<1x128xf32>
    %87 = vector.broadcast %86 : vector<1x128xf32> to vector<32x128xf32>
    %88 = arith.addf %85, %87 : vector<32x128xf32>
    %89 = arith.addf %88, %1 : vector<32x128xf32>
    %c0_31 = arith.constant 0 : index
    %c0_32 = arith.constant 0 : index
    %90 = vector.load %arg7[%c0_31, %c0_32] : memref<1x128xf32, #tpu.memory_space<vmem>>, vector<1x128xf32>
    %c0_33 = arith.constant 0 : index
    %c0_34 = arith.constant 0 : index
    %91 = vector.load %arg8[%c0_33, %c0_34] : memref<1x128xf32, #tpu.memory_space<vmem>>, vector<1x128xf32>
    %cst_35 = arith.constant dense<0.000000e+00> : vector<32xf32>
    %92 = vector.multi_reduction <add>, %89, %cst_35 [1] : vector<32x128xf32> to vector<32xf32>
    %93 = vector.shape_cast %92 : vector<32xf32> to vector<32x1xf32>
    %cst_36 = arith.constant 1.280000e+02 : f32
    %94 = vector.broadcast %cst_36 : f32 to vector<32x1xf32>
    %95 = arith.divf %93, %94 : vector<32x1xf32>
    %96 = vector.broadcast %95 : vector<32x1xf32> to vector<32x128xf32>
    %97 = arith.subf %89, %96 : vector<32x128xf32>
    %98 = arith.mulf %97, %97 : vector<32x128xf32>
    %cst_37 = arith.constant dense<0.000000e+00> : vector<32xf32>
    %99 = vector.multi_reduction <add>, %98, %cst_37 [1] : vector<32x128xf32> to vector<32xf32>
    %100 = vector.shape_cast %99 : vector<32xf32> to vector<32x1xf32>
    %cst_38 = arith.constant 1.280000e+02 : f32
    %101 = vector.broadcast %cst_38 : f32 to vector<32x1xf32>
    %102 = arith.divf %100, %101 : vector<32x1xf32>
    %cst_39 = arith.constant 9.99999974E-6 : f32
    %103 = vector.broadcast %cst_39 : f32 to vector<32x1xf32>
    %104 = arith.addf %102, %103 : vector<32x1xf32>
    %105 = math.rsqrt %104 : vector<32x1xf32>
    %106 = vector.broadcast %105 : vector<32x1xf32> to vector<32x128xf32>
    %107 = arith.mulf %97, %106 : vector<32x128xf32>
    %108 = vector.broadcast %90 : vector<1x128xf32> to vector<32x128xf32>
    %109 = arith.mulf %107, %108 : vector<32x128xf32>
    %110 = vector.broadcast %91 : vector<1x128xf32> to vector<32x128xf32>
    %111 = arith.addf %109, %110 : vector<32x128xf32>
    %112 = arith.truncf %111 : vector<32x128xf32> to vector<32x128xbf16>
    %c0_40 = arith.constant 0 : index
    %c0_41 = arith.constant 0 : index
    %113 = vector.load %arg9[%c0_40, %c0_41] : memref<128x256xbf16, #tpu.memory_space<vmem>>, vector<128x256xbf16>
    %cst_42 = arith.constant dense<0.000000e+00> : vector<32x256xf32>
    %114 = tpu.matmul %112, %113, %cst_42 {dimension_numbers = #tpu.dot_dimension_numbers<[1], [0], [0], [1], [0, 0, 1, 1], [], []>} : vector<32x128xbf16>, vector<128x256xbf16>, vector<32x256xf32> -> vector<32x256xf32>
    %c0_43 = arith.constant 0 : index
    %c0_44 = arith.constant 0 : index
    %115 = vector.load %arg10[%c0_43, %c0_44] : memref<1x256xf32, #tpu.memory_space<vmem>>, vector<1x256xf32>
    %116 = vector.broadcast %115 : vector<1x256xf32> to vector<32x256xf32>
    %117 = arith.addf %114, %116 : vector<32x256xf32>
    %cst_45 = arith.constant 5.000000e-01 : f32
    %118 = vector.broadcast %cst_45 : f32 to vector<32x256xf32>
    %119 = arith.mulf %118, %117 : vector<32x256xf32>
    %cst_46 = arith.constant 4.471500e-02 : f32
    %120 = vector.broadcast %cst_46 : f32 to vector<32x256xf32>
    %121 = arith.mulf %120, %117 : vector<32x256xf32>
    %122 = arith.mulf %121, %117 : vector<32x256xf32>
    %123 = arith.mulf %122, %117 : vector<32x256xf32>
    %124 = arith.addf %117, %123 : vector<32x256xf32>
    %cst_47 = arith.constant 0.797884583 : f32
    %125 = vector.broadcast %cst_47 : f32 to vector<32x256xf32>
    %126 = arith.mulf %125, %124 : vector<32x256xf32>
    %127 = math.tanh %126 : vector<32x256xf32>
    %cst_48 = arith.constant 1.000000e+00 : f32
    %128 = vector.broadcast %cst_48 : f32 to vector<32x256xf32>
    %129 = arith.addf %128, %127 : vector<32x256xf32>
    %130 = arith.mulf %119, %129 : vector<32x256xf32>
    %131 = arith.truncf %130 : vector<32x256xf32> to vector<32x256xbf16>
    %c0_49 = arith.constant 0 : index
    %c0_50 = arith.constant 0 : index
    %132 = vector.load %arg11[%c0_49, %c0_50] : memref<256x128xbf16, #tpu.memory_space<vmem>>, vector<256x128xbf16>
    %cst_51 = arith.constant dense<0.000000e+00> : vector<32x128xf32>
    %133 = tpu.matmul %131, %132, %cst_51 {dimension_numbers = #tpu.dot_dimension_numbers<[1], [0], [0], [1], [0, 0, 1, 1], [], []>} : vector<32x256xbf16>, vector<256x128xbf16>, vector<32x128xf32> -> vector<32x128xf32>
    %c0_52 = arith.constant 0 : index
    %c0_53 = arith.constant 0 : index
    %134 = vector.load %arg12[%c0_52, %c0_53] : memref<1x128xf32, #tpu.memory_space<vmem>>, vector<1x128xf32>
    %135 = vector.broadcast %134 : vector<1x128xf32> to vector<32x128xf32>
    %136 = arith.addf %133, %135 : vector<32x128xf32>
    %137 = arith.addf %136, %89 : vector<32x128xf32>
    %138 = vector.shape_cast %137 : vector<32x128xf32> to vector<2x16x128xf32>
    %c0_54 = arith.constant 0 : index
    %c0_55 = arith.constant 0 : index
    %c0_56 = arith.constant 0 : index
    %139 = vector.load %arg15[%c0_54, %c0_55, %c0_56] : memref<2x16x128xf32, #tpu.memory_space<vmem>>, vector<2x16x128xf32>
    tpu.vector_store %arg15[%c0_54, %c0_55, %c0_56], %138 {strides = array<i32>} : memref<2x16x128xf32, #tpu.memory_space<vmem>>, vector<2x16x128xf32>,
    return
  }
  func.func @transform_0(%arg0: i32) -> (i32, i32, i32) {
    %c0_i32 = arith.constant 0 : i32
    %c0_i32_0 = arith.constant 0 : i32
    %c0_i32_1 = arith.constant 0 : i32
    return %arg0, %c0_i32, %c0_i32_0 : i32, i32, i32
  }
  func.func @transform_1(%arg0: i32) -> (i32, i32) {
    %c0_i32 = arith.constant 0 : i32
    %c0_i32_0 = arith.constant 0 : i32
    %c0_i32_1 = arith.constant 0 : i32
    return %c0_i32, %c0_i32_0 : i32, i32
  }
  func.func @transform_2(%arg0: i32) -> (i32, i32) {
    %c0_i32 = arith.constant 0 : i32
    %c0_i32_0 = arith.constant 0 : i32
    %c0_i32_1 = arith.constant 0 : i32
    return %c0_i32, %c0_i32_0 : i32, i32
  }
  func.func @transform_3(%arg0: i32) -> (i32, i32) {
    %c0_i32 = arith.constant 0 : i32
    %c0_i32_0 = arith.constant 0 : i32
    %c0_i32_1 = arith.constant 0 : i32
    return %c0_i32, %c0_i32_0 : i32, i32
  }
  func.func @transform_4(%arg0: i32) -> (i32, i32) {
    %c0_i32 = arith.constant 0 : i32
    %c0_i32_0 = arith.constant 0 : i32
    %c0_i32_1 = arith.constant 0 : i32
    return %c0_i32, %c0_i32_0 : i32, i32
  }
  func.func @transform_5(%arg0: i32) -> (i32, i32) {
    %c0_i32 = arith.constant 0 : i32
    %c0_i32_0 = arith.constant 0 : i32
    %c0_i32_1 = arith.constant 0 : i32
    return %c0_i32, %c0_i32_0 : i32, i32
  }
  func.func @transform_6(%arg0: i32) -> (i32, i32) {
    %c0_i32 = arith.constant 0 : i32
    %c0_i32_0 = arith.constant 0 : i32
    %c0_i32_1 = arith.constant 0 : i32
    return %c0_i32, %c0_i32_0 : i32, i32
  }
  func.func @transform_7(%arg0: i32) -> (i32, i32) {
    %c0_i32 = arith.constant 0 : i32
    %c0_i32_0 = arith.constant 0 : i32
    %c0_i32_1 = arith.constant 0 : i32
    return %c0_i32, %c0_i32_0 : i32, i32
  }
  func.func @transform_8(%arg0: i32) -> (i32, i32) {
    %c0_i32 = arith.constant 0 : i32
    %c0_i32_0 = arith.constant 0 : i32
    %c0_i32_1 = arith.constant 0 : i32
    return %c0_i32, %c0_i32_0 : i32, i32
  }
  func.func @transform_9(%arg0: i32) -> (i32, i32) {
    %c0_i32 = arith.constant 0 : i32
    %c0_i32_0 = arith.constant 0 : i32
    %c0_i32_1 = arith.constant 0 : i32
    return %c0_i32, %c0_i32_0 : i32, i32
  }
  func.func @transform_10(%arg0: i32) -> (i32, i32) {
    %c0_i32 = arith.constant 0 : i32
    %c0_i32_0 = arith.constant 0 : i32
    %c0_i32_1 = arith.constant 0 : i32
    return %c0_i32, %c0_i32_0 : i32, i32
  }
  func.func @transform_11(%arg0: i32) -> (i32, i32) {
    %c0_i32 = arith.constant 0 : i32
    %c0_i32_0 = arith.constant 0 : i32
    %c0_i32_1 = arith.constant 0 : i32
    return %c0_i32, %c0_i32_0 : i32, i32
  }
  func.func @transform_12(%arg0: i32) -> (i32, i32) {
    %c0_i32 = arith.constant 0 : i32
    %c0_i32_0 = arith.constant 0 : i32
    %c0_i32_1 = arith.constant 0 : i32
    return %c0_i32, %c0_i32_0 : i32, i32
  }
  func.func @transform_13(%arg0: i32) -> (i32, i32) {
    %c0_i32 = arith.constant 0 : i32
    %c0_i32_0 = arith.constant 0 : i32
    %c0_i32_1 = arith.constant 0 : i32
    return %c0_i32, %c0_i32_0 : i32, i32
  }
  func.func @transform_14(%arg0: i32) -> (i32, i32, i32) {
    %c0_i32 = arith.constant 0 : i32
    %c0_i32_0 = arith.constant 0 : i32
    %c0_i32_1 = arith.constant 0 : i32
    return %arg0, %c0_i32, %c0_i32_0 : i32, i32, i32
  }
}

</mosaic_0001>

<bundles_post_ra>
// kernel: tpu_custom_call.1
= control target key start
LH: loop header
LB: loop body
LE: loop exit
PB: predicated region body
PF: predicated region fallthrough
CT: control target
= control target key end

     0   :  { %19 = vsyncpa [#allocation3], 0  ;;  %s2760_s0 = inlined_call_operand.hbm [shape: f32[2,16,128], index: 0, kind: input, shape index: {}]   ;;  %s2761_s1 = inlined_call_operand.hbm [shape: f32[1,128], index: 1, kind: input, shape index: {}]   ;;  %s2762_s2 = inlined_call_operand.vmem [shape: f32[1,128], index: 2, kind: input, shape index: {}]   ;;  %s2763_s3 = inlined_call_operand.hbm [shape: bf16[128,768], index: 3, kind: input, shape index: {}]   ;;  %s2764_s4 = inlined_call_operand.hbm [shape: bf16[256,128], index: 4, kind: input, shape index: {}]   ;;  %s2765_s5 = inlined_call_operand.vmem [shape: f32[1,128], index: 5, kind: input, shape index: {}]   ;;  %s2766_s6 = inlined_call_operand.vmem [shape: f32[1,128], index: 6, kind: input, shape index: {}]   ;;  %s2767_s7 = inlined_call_operand.vmem [shape: f32[1,128], index: 7, kind: input, shape index: {}]   ;;  %s2768_s8 = inlined_call_operand.hbm [shape: bf16[128,256], index: 8, kind: input, shape index: {}]   ;;  %s2769_s9 = inlined_call_operand.vmem [shape: f32[1,256], index: 9, kind: input, shape index: {}]   ;;  %s2770_s10 = inlined_call_operand.hbm [shape: bf16[256,128], index: 10, kind: input, shape index: {}]   ;;  %s2771_s11 = inlined_call_operand.vmem [shape: f32[1,128], index: 11, kind: input, shape index: {}]   ;;  %s2772_s12 = inlined_call_operand.vmem [shape: f32[1,128], index: 12, kind: input, shape index: {}]   ;;  %s2773_s13 = inlined_call_operand.vmem [shape: f32[1,128], index: 13, kind: input, shape index: {}]   ;;  %s2774_s14 = inlined_call_operand.hbm [shape: f32[2,16,128], index: 14, kind: output, shape index: {}]  }
   0x1   :  { %20 = vsyncpa [#allocation6], 0 }
   0x2   :  { %21 = vsyncpa [#allocation9], 0 }
   0x3   :  { %22 = vsyncpa [#allocation12], 0  ;;  %s42_s15 = sshll.u32 %s2761_s1, 4  ;;  %s43_s15 = int_to_ptr.hbm [resolvable:$true] %s42_s15 }
   0x4   :  { %23 = vsyncpa [#allocation4], 0  ;;  %s2461_s16 = smov [#allocation5]   ;;  %s67_s13 = sshll.u32 %s2764_s4, 4  ;;  %s68_s13 = int_to_ptr.hbm [resolvable:$true] %s67_s13 }
   0x5   :  { %s44_s17 = sshll.u32 %s2461_s16, 4  ;;  %s2462_s19 = smov [#allocation8]   ;;  %s45_s17 = int_to_ptr.vmem [resolvable:$true] %s44_s17 }
   0x6   :  { %47 = dma.hbm_to_vmem [thread:$0]  %s43_s15, 16, %s45_s17, [#allocation6]  }
   0x7   :  { %s69_s20 = sshll.u32 %s2462_s19, 4  ;;  %s2463_s21 = smov 64   ;;  %s70_s20 = int_to_ptr.vmem [resolvable:$true] %s69_s20 }
   0x8   :  { %s2464_s22 = smov 4   ;;  %s28_s24 = sshll.u32 %s2760_s0, 4  ;;  %s29_s24 = int_to_ptr.hbm [resolvable:$true] %s28_s24 }
   0x9   :  { %75 = dma.hbm_to_vmem [thread:$0]  %s68_s13, 2048, %s70_s20, [#allocation9], %s2463_s21, %s2463_s21, %s2464_s22  }
   0xa   :  { %s2465_s25 = smov [#allocation2]   ;;  %s54_s28 = sshll.u32 %s2763_s3, 4  ;;  %s55_s28 = int_to_ptr.hbm [resolvable:$true] %s54_s28 }
   0xb   :  { %s30_s26 = sshll.u32 %s2465_s25, 4  ;;  %s2466_s29 = smov 128   ;;  %s31_s26 = int_to_ptr.vmem [resolvable:$true] %s30_s26 }
   0xc   :  { %s2467_s30 = smov 8   ;;  %s2468_s15 = smov [#allocation7]  }
   0xd   :  { %36 = dma.hbm_to_vmem [thread:$0]  %s29_s24, 512, %s31_s26, [#allocation3], %s2466_s29, %s2466_s29, %s2467_s30  }
   0xe   :  { %s56_s16 = sshll.u32 %s2468_s15, 4  ;;  %s2469_s17 = smov 384   ;;  %s57_s16 = int_to_ptr.vmem [resolvable:$true] %s56_s16 }
   0xf   :  { %s2470_s0 = smov 24   ;;  %s86_s13 = sshll.u32 %s2768_s8, 4  ;;  %s87_s13 = int_to_ptr.hbm [resolvable:$true] %s86_s13 }
  0x10   :  { %62 = dma.hbm_to_vmem [thread:$0]  %s55_s28, 6144, %s57_s16, [#allocation6], %s2469_s17, %s2469_s17, %s2470_s0  }
  0x11   :  { %s2471_s19 = smov [#allocation10]   ;;  %s101_s23 = sshll.u32 %s2770_s10, 4  ;;  %s102_s23 = int_to_ptr.hbm [resolvable:$true] %s101_s23 }
  0x12   :  { %s88_s3 = sshll.u32 %s2471_s19, 4  ;;  %s2472_s24 = smov [#allocation11]   ;;  %s89_s3 = int_to_ptr.vmem [resolvable:$true] %s88_s3 }
  0x13   :  { %94 = dma.hbm_to_vmem [thread:$0]  %s87_s13, 2048, %s89_s3, [#allocation9], %s2466_s29, %s2466_s29, %s2467_s30  }
  0x14   :  { %s103_s25 = sshll.u32 %s2472_s24, 4  ;;  %s104_s25 = int_to_ptr.vmem [resolvable:$true] %s103_s25 }
  0x15   :  { %109 = dma.hbm_to_vmem [thread:$0]  %s102_s23, 2048, %s104_s25, [#allocation12], %s2463_s21, %s2463_s21, %s2464_s22  }
  0x16   :  { %2451 = dma.done.wait [#allocation3], 512  }
  0x17   :  { %2452 = vsyncadd [#allocation3], 4294966784 }
  0x18   :  { %2453 = dma.done.wait [#allocation6], 6160  }
  0x19   :  { %2454 = vsyncadd [#allocation6], 4294961136 }
  0x1a   :  { %2455 = dma.done.wait [#allocation9], 4096  }
  0x1b   :  { %2456 = vsyncadd [#allocation9], 4294963200 }
  0x1c   :  { %2457 = dma.done.wait [#allocation12], 2048  }
  0x1d   :  { %2458 = vsyncadd [#allocation12], 4294965248  ;;  %v143_v0 = vld [vmem:[#allocation2 + $0x10] sm:$0xff]  ;;  %v141_v1 = vld [vmem:[#allocation2] sm:$0xff]  ;;  %v2473_v4 = vmov 128.0   ;;  %vm720_vm13 = vcmask 130048  }
  0x1e   :  { %151 = vadd.xlane.f32.xlu1 %v143_v0  ;;  %147 = vadd.xlane.f32.xlu0 %v141_v1  ;;  %v144_v2 = vld [vmem:[#allocation2 + $0x18] sm:$0xff]  ;;  %v142_v3 = vld [vmem:[#allocation2 + $0x8] sm:$0xff]  ;;  %2213 = vrcp.f32 %v2473_v4  ;;  %v1863_v27 = vld [vmem:[#allocation7 + $0x150] sm:$0xf]  ;;  %s1677_s17 = sshll.u32 %s2774_s14, 4  ;;  %s1678_s17 = int_to_ptr.hbm [resolvable:$true] %s1677_s17 }
  0x1f   :  { %v2126_v28 = vld [vmem:[#allocation7 + $0x164] sm:$0xf0]  ;;  %v2123_v29 = vld [vmem:[#allocation7 + $0x154] sm:$0xf]  ;;  %v1865_v31 = vld [vmem:[#allocation7 + $0x168] sm:$0xf0] }
  0x20   :  { %v1864_v30 = vor.u32 %v2126_v28, %v1863_v27  ;;  %v1871_v32 = vld [vmem:[#allocation7 + $0x158] sm:$0xf]  ;;  %v2127_v33 = vld [vmem:[#allocation7 + $0x16c] sm:$0xf0]  ;;  %v1868_v34 = vor.u32 %v2123_v29, %v1865_v31  ;;  %v2124_v36 = vld [vmem:[#allocation7 + $0x15c] sm:$0xf] }
  0x21   :  { %v1872_v35 = vor.u32 %v2127_v33, %v1871_v32  ;;  %v1873_v37 = vld [vmem:[#allocation7 + $0x170] sm:$0xf0]  ;;  %v1839_v39 = vld [vmem:[#allocation7 + $0x120] sm:$0xf]  ;;  %v2120_v40 = vld [vmem:[#allocation7 + $0x134] sm:$0xf0] }
  0x22   :  { %538 = vmatpush.bf16.msra.mxu0 %v1864_v30  ;;  %v1876_v38 = vor.u32 %v2124_v36, %v1873_v37  ;;  %557 = vmatpush.bf16.msra.mxu1 %v1868_v34  ;;  %v2117_v41 = vld [vmem:[#allocation7 + $0x124] sm:$0xf]  ;;  %v1840_v42 = vor.u32 %v2120_v40, %v1839_v39  ;;  %v1841_v43 = vld [vmem:[#allocation7 + $0x138] sm:$0xf0]  ;;  %v1847_v44 = vld [vmem:[#allocation7 + $0x128] sm:$0xf] }
  0x23   :  { %576 = vmatpush.bf16.msra.mxu2 %v1872_v35  ;;  %v2121_v45 = vld [vmem:[#allocation7 + $0x13c] sm:$0xf0]  ;;  %v1844_v46 = vor.u32 %v2117_v41, %v1841_v43  ;;  %v2118_v48 = vld [vmem:[#allocation7 + $0x12c] sm:$0xf]  ;;  %v1849_v49 = vld [vmem:[#allocation7 + $0x140] sm:$0xf0] }
  0x24   :  { %v2214_v5 = vpop.eup %2213  ;;  %595 = vmatpush.bf16.msra.mxu3 %v1876_v38  ;;  %v1848_v47 = vor.u32 %v2121_v45, %v1847_v44  ;;  %v1852_v50 = vor.u32 %v2118_v48, %v1849_v49  ;;  %v1815_v51 = vld [vmem:[#allocation7 + $0xf0] sm:$0xf]  ;;  %v2114_v52 = vld [vmem:[#allocation7 + $0x104] sm:$0xf0]  ;;  %v2111_v53 = vld [vmem:[#allocation7 + $0xf4] sm:$0xf] }
  0x25   :  { %v156_v6 = vmul.f32 128.0, %v2214_v5  ;;  %vm160_vm0 = vweird.f32 %v2214_v5  ;;  %v1816_v54 = vor.u32 %v2114_v52, %v1815_v51  ;;  %v1817_v55 = vld [vmem:[#allocation7 + $0x108] sm:$0xf0]  ;;  %v1823_v56 = vld [vmem:[#allocation7 + $0xf8] sm:$0xf] }
  0x26   :  { %153 = vadd.xlane.f32.xlu1 %v144_v2  ;;  %149 = vadd.xlane.f32.xlu0 %v142_v3  ;;  %v2115_v57 = vld [vmem:[#allocation7 + $0x10c] sm:$0xf0]  ;;  %v1820_v58 = vor.u32 %v2111_v53, %v1817_v55  ;;  %v2112_v60 = vld [vmem:[#allocation7 + $0xfc] sm:$0xf]  ;;  %v1825_v61 = vld [vmem:[#allocation7 + $0x110] sm:$0xf0] }
  0x27   :  { %v157_v7 = vsub.f32 1.0, %v156_v6  ;;  %539 = vmatpush.bf16.msra.mxu0 %v1840_v42  ;;  %558 = vmatpush.bf16.msra.mxu1 %v1844_v46  ;;  %v1824_v59 = vor.u32 %v2115_v57, %v1823_v56  ;;  %v1828_v62 = vor.u32 %v2112_v60, %v1825_v61  ;;  %v1791_v63 = vld [vmem:[#allocation7 + $0xc0] sm:$0xf]  ;;  %v1799_v4 = vld [vmem:[#allocation7 + $0xc8] sm:$0xf] }
  0x28   :  { %577 = vmatpush.bf16.msra.mxu2 %v1848_v47  ;;  %596 = vmatpush.bf16.msra.mxu3 %v1852_v50  ;;  %v1743_v28 = vld [vmem:[#allocation7 + $0x60] sm:$0xf]  ;;  %v2096_v29 = vld [vmem:[#allocation7 + $0x74] sm:$0xf0]  ;;  %v2093_v30 = vld [vmem:[#allocation7 + $0x64] sm:$0xf] }
  0x29   :  { %v158_v8 = vmul.f32 %v2214_v5, %v157_v7  ;;  %v1744_v31 = vor.u32 %v2096_v29, %v1743_v28  ;;  %v1745_v32 = vld [vmem:[#allocation7 + $0x78] sm:$0xf0]  ;;  %v1751_v33 = vld [vmem:[#allocation7 + $0x68] sm:$0xf]  ;;  %v2097_v34 = vld [vmem:[#allocation7 + $0x7c] sm:$0xf0] }
  0x2a   :  { %v1748_v35 = vor.u32 %v2093_v30, %v1745_v32  ;;  %v1752_v36 = vor.u32 %v2097_v34, %v1751_v33  ;;  %v2094_v37 = vld [vmem:[#allocation7 + $0x6c] sm:$0xf]  ;;  %v1753_v38 = vld [vmem:[#allocation7 + $0x80] sm:$0xf0]  ;;  %v1719_v40 = vld [vmem:[#allocation7 + $0x30] sm:$0xf] }
  0x2b   :  { %v159_v9 = vadd.f32 %v2214_v5, %v158_v8  ;;  %540 = vmatpush.bf16.msra.mxu0 %v1816_v54  ;;  %559 = vmatpush.bf16.msra.mxu1 %v1820_v58  ;;  %v2106_v8 = vld [vmem:[#allocation7 + $0xcc] sm:$0xf]  ;;  %v1756_v39 = vor.u32 %v2094_v37, %v1753_v38  ;;  %v2090_v41 = vld [vmem:[#allocation7 + $0x44] sm:$0xf0]  ;;  %v2087_v42 = vld [vmem:[#allocation7 + $0x34] sm:$0xf] }
  0x2c   :  { %578 = vmatpush.bf16.msra.mxu2 %v1824_v59  ;;  %597 = vmatpush.bf16.msra.mxu3 %v1828_v62  ;;  %v1720_v43 = vor.u32 %v2090_v41, %v1719_v40  ;;  %v1721_v44 = vld [vmem:[#allocation7 + $0x48] sm:$0xf0]  ;;  %v1727_v45 = vld [vmem:[#allocation7 + $0x38] sm:$0xf]  ;;  %v2091_v46 = vld [vmem:[#allocation7 + $0x4c] sm:$0xf0] }
  0x2d   :  { %v2580_v10 = vsel %vm160_vm0, %v2214_v5, %v159_v9  ;;  %v2109_v5 = vld [vmem:[#allocation7 + $0xdc] sm:$0xf0]  ;;  %v1801_v9 = vld [vmem:[#allocation7 + $0xe0] sm:$0xf0]  ;;  %v1724_v48 = vor.u32 %v2087_v42, %v1721_v44  ;;  %v1728_v49 = vor.u32 %v2091_v46, %v1727_v45  ;;  %v2088_v50 = vld [vmem:[#allocation7 + $0x3c] sm:$0xf] }
  0x2e   :  { %v1800_v7 = vor.u32 %v2109_v5, %v1799_v4  ;;  %v1729_v51 = vld [vmem:[#allocation7 + $0x50] sm:$0xf0]  ;;  %v1695_v55 = vld [vmem:[#allocation7] sm:$0xf]  ;;  %v2084_v56 = vld [vmem:[#allocation7 + $0x14] sm:$0xf0] }
  0x2f   :  { %v1732_v54 = vor.u32 %v2088_v50, %v1729_v51  ;;  %v2081_v57 = vld [vmem:[#allocation7 + $0x4] sm:$0xf]  ;;  %v1696_v59 = vor.u32 %v2084_v56, %v1695_v55  ;;  %v1697_v60 = vld [vmem:[#allocation7 + $0x18] sm:$0xf0]  ;;  %v1879_v5 = vld [vmem:[#allocation7 + $0x160] sm:$0xf] }
  0x30   :  { %579 = vmatpush.bf16.msra.mxu2 %v1800_v7  ;;  %v1700_v62 = vor.u32 %v2081_v57, %v1697_v60  ;;  %v2125_v7 = vld [vmem:[#allocation7 + $0x164] sm:$0xf]  ;;  %v1833_v34 = vld [vmem:[#allocation7 + $0x118] sm:$0xf0]  ;;  %v1807_v38 = vld [vmem:[#allocation7 + $0xd0] sm:$0xf] }
  0x31   :  { %v2113_v33 = vld [vmem:[#allocation7 + $0x104] sm:$0xf]  ;;  %v2107_v41 = vld [vmem:[#allocation7 + $0xd4] sm:$0xf]  ;;  %v1809_v42 = vld [vmem:[#allocation7 + $0xe8] sm:$0xf0] }
  0x32   :  { %v1836_v37 = vor.u32 %v2113_v33, %v1833_v34  ;;  %v1783_v55 = vld [vmem:[#allocation7 + $0xa0] sm:$0xf]  ;;  %v2104_v56 = vld [vmem:[#allocation7 + $0xb4] sm:$0xf0]  ;;  %v2101_v57 = vld [vmem:[#allocation7 + $0xa4] sm:$0xf] }
  0x33   :  { %v1784_v60 = vor.u32 %v2104_v56, %v1783_v55  ;;  %v2083_v33 = vld [vmem:[#allocation7 + $0x14] sm:$0xf] }
  0x91   :  { %v152_v11 = vpop.xlane.xlu1 %151  ;;  %v148_v12 = vpop.xlane.xlu0 %147 }
  0x92   :  { %v164_v13 = vmul.f32 %v2580_v10, %v152_v11  ;;  %v162_v14 = vmul.f32 %v2580_v10, %v148_v12  ;;  %v1804_v11 = vor.u32 %v2106_v8, %v1801_v9  ;;  %v1767_v12 = vld [vmem:[#allocation7 + $0x90] sm:$0xf] }
  0x94   :  { %v2584_v15 = vsub.f32 %v143_v0, %v164_v13  ;;  %v2586_v16 = vsub.f32 %v141_v1, %v162_v14  ;;  %v2108_v0 = vld [vmem:[#allocation7 + $0xd4] sm:$0xf0]  ;;  %v2105_v1 = vld [vmem:[#allocation7 + $0xc4] sm:$0xf]  ;;  %v2102_v13 = vld [vmem:[#allocation7 + $0xa4] sm:$0xf0]  ;;  %598 = vmatpush.bf16.msra.mxu3 %v1804_v11 }
  0x95   :  { %v2099_v14 = vld [vmem:[#allocation7 + $0x94] sm:$0xf] }
  0x96   :  { %v172_v17 = vmul.f32 %v2584_v15, %v2584_v15  ;;  %v170_v18 = vmul.f32 %v2586_v16, %v2586_v16 }
  0x98   :  { %178 = vadd.xlane.f32.xlu0 %v172_v17  ;;  %174 = vadd.xlane.f32.xlu2 %v170_v18  ;;  %v1768_v17 = vor.u32 %v2102_v13, %v1767_v12  ;;  %v1769_v18 = vld [vmem:[#allocation7 + $0xa8] sm:$0xf0]  ;;  %v1881_v13 = vld [vmem:[#allocation7 + $0x178] sm:$0xf0] }
  0x99   :  { %v154_v19 = vpop.xlane.xlu1 %153  ;;  %v150_v20 = vpop.xlane.xlu0 %149 }
  0x9a   :  { %v165_v21 = vmul.f32 %v2580_v10, %v154_v19  ;;  %v163_v22 = vmul.f32 %v2580_v10, %v150_v20  ;;  %v1775_v19 = vld [vmem:[#allocation7 + $0x98] sm:$0xf]  ;;  %v2103_v20 = vld [vmem:[#allocation7 + $0xac] sm:$0xf0] }
  0x9c   :  { %v2594_v23 = vsub.f32 %v144_v2, %v165_v21  ;;  %v2596_v24 = vsub.f32 %v142_v3, %v163_v22  ;;  %v1792_v2 = vor.u32 %v2108_v0, %v1791_v63  ;;  %v1793_v3 = vld [vmem:[#allocation7 + $0xd8] sm:$0xf0]  ;;  %v1772_v21 = vor.u32 %v2099_v14, %v1769_v18  ;;  %v1703_v63 = vld [vmem:[#allocation7 + $0x8] sm:$0xf]  ;;  %v2085_v0 = vld [vmem:[#allocation7 + $0x1c] sm:$0xf0] }
  0x9d   :  { %v1796_v6 = vor.u32 %v2105_v1, %v1793_v3  ;;  %v1776_v22 = vor.u32 %v2103_v20, %v1775_v19  ;;  %v2082_v1 = vld [vmem:[#allocation7 + $0xc] sm:$0xf]  ;;  %v1705_v3 = vld [vmem:[#allocation7 + $0x20] sm:$0xf0]  ;;  %v1884_v18 = vor.u32 %v2125_v7, %v1881_v13  ;;  %v1855_v19 = vld [vmem:[#allocation7 + $0x130] sm:$0xf] }
  0x9e   :  { %v173_v25 = vmul.f32 %v2594_v23, %v2594_v23  ;;  %v171_v26 = vmul.f32 %v2596_v24, %v2596_v24  ;;  %541 = vmatpush.bf16.msra.mxu0 %v1792_v2  ;;  %v1704_v2 = vor.u32 %v2085_v0, %v1703_v63  ;;  %v1708_v4 = vor.u32 %v2082_v1, %v1705_v3  ;;  %v2122_v20 = vld [vmem:[#allocation7 + $0x144] sm:$0xf0]  ;;  %v1759_v1 = vld [vmem:[#allocation7 + $0x70] sm:$0xf]  ;;  %v2207_v13 = vld [vmem:[#allocation5] ss:$0 sm:$0xff] }
  0x9f   :  { %560 = vmatpush.bf16.msra.mxu1 %v1796_v6  ;;  %580 = vmatpush.bf16.msra.mxu2 %v1776_v22  ;;  %v2128_v6 = vld [vmem:[#allocation7 + $0x174] sm:$0xf0]  ;;  %v1856_v22 = vor.u32 %v2122_v20, %v1855_v19 }
  0xa0   :  { %180 = vadd.xlane.f32.xlu1 %v173_v25  ;;  %176 = vadd.xlane.f32.xlu2 %v171_v26  ;;  %v2100_v25 = vld [vmem:[#allocation7 + $0x9c] sm:$0xf]  ;;  %v1777_v26 = vld [vmem:[#allocation7 + $0xb0] sm:$0xf0]  ;;  %v1880_v12 = vor.u32 %v2128_v6, %v1879_v5  ;;  %v1761_v5 = vld [vmem:[#allocation7 + $0x88] sm:$0xf0] }
  0xa1   :  { %v1780_v27 = vor.u32 %v2100_v25, %v1777_v26  ;;  %v1857_v25 = vld [vmem:[#allocation7 + $0x148] sm:$0xf0]  ;;  %v1831_v26 = vld [vmem:[#allocation7 + $0x100] sm:$0xf] }
  0xa2   :  { %542 = vmatpush.bf16.msra.mxu0 %v1768_v17 }
  0xa3   :  { %561 = vmatpush.bf16.msra.mxu1 %v1772_v21  ;;  %599 = vmatpush.bf16.msra.mxu3 %v1780_v27  ;;  %v2119_v21 = vld [vmem:[#allocation7 + $0x134] sm:$0xf] }
  0xa4   :  { %581 = vmatpush.bf16.msra.mxu2 %v1752_v36  ;;  %v1860_v30 = vor.u32 %v2119_v21, %v1857_v25 }
  0xa6   :  { %543 = vmatpush.bf16.msra.mxu0 %v1744_v31  ;;  %v2116_v31 = vld [vmem:[#allocation7 + $0x114] sm:$0xf0] }
  0xa7   :  { %562 = vmatpush.bf16.msra.mxu1 %v1748_v35  ;;  %600 = vmatpush.bf16.msra.mxu3 %v1756_v39  ;;  %v1832_v36 = vor.u32 %v2116_v31, %v1831_v26  ;;  %v2110_v39 = vld [vmem:[#allocation7 + $0xe4] sm:$0xf0] }
  0xa8   :  { %582 = vmatpush.bf16.msra.mxu2 %v1728_v49  ;;  %v1808_v45 = vor.u32 %v2110_v39, %v1807_v38 }
  0xaa   :  { %544 = vmatpush.bf16.msra.mxu0 %v1720_v43 }
  0xab   :  { %563 = vmatpush.bf16.msra.mxu1 %v1724_v48  ;;  %601 = vmatpush.bf16.msra.mxu3 %v1732_v54 }
  0xac   :  { %583 = vmatpush.bf16.msra.mxu2 %v1704_v2  ;;  %v2098_v2 = vld [vmem:[#allocation7 + $0x84] sm:$0xf0] }
  0xad   :  { %v1760_v3 = vor.u32 %v2098_v2, %v1759_v1 }
  0xae   :  { %545 = vmatpush.bf16.msra.mxu0 %v1696_v59 }
  0xaf   :  { %564 = vmatpush.bf16.msra.mxu1 %v1700_v62  ;;  %602 = vmatpush.bf16.msra.mxu3 %v1708_v4  ;;  %v2095_v4 = vld [vmem:[#allocation7 + $0x74] sm:$0xf] }
  0xb0   :  { %2177 = vmatpush.bf16.msrb.mxu2 %v1880_v12 }
  0xb2   :  { %614 = vmatpush.bf16.msrb.mxu0 %v1880_v12  ;;  %v2092_v12 = vld [vmem:[#allocation7 + $0x54] sm:$0xf0] }
  0xb3   :  { %633 = vmatpush.bf16.msrb.mxu1 %v1884_v18  ;;  %2185 = vmatpush.bf16.msrb.mxu3 %v1884_v18  ;;  %v1737_v18 = vld [vmem:[#allocation7 + $0x58] sm:$0xf0] }
  0xb4   :  { %2178 = vmatpush.bf16.msrb.mxu2 %v1856_v22 }
  0xb6   :  { %615 = vmatpush.bf16.msrb.mxu0 %v1856_v22 }
  0xb7   :  { %634 = vmatpush.bf16.msrb.mxu1 %v1860_v30  ;;  %2186 = vmatpush.bf16.msrb.mxu3 %v1860_v30  ;;  %v2086_v30 = vld [vmem:[#allocation7 + $0x24] sm:$0xf0] }
  0xb8   :  { %2179 = vmatpush.bf16.msrb.mxu2 %v1832_v36 }
  0xba   :  { %616 = vmatpush.bf16.msrb.mxu0 %v1832_v36 }
  0xbb   :  { %635 = vmatpush.bf16.msrb.mxu1 %v1836_v37  ;;  %2187 = vmatpush.bf16.msrb.mxu3 %v1836_v37 }
  0xbc   :  { %2180 = vmatpush.bf16.msrb.mxu2 %v1808_v45 }
  0xbe   :  { %617 = vmatpush.bf16.msrb.mxu0 %v1808_v45 }
  0xc0   :  { %2181 = vmatpush.bf16.msrb.mxu2 %v1784_v60 }
  0xc2   :  { %618 = vmatpush.bf16.msrb.mxu0 %v1784_v60 }
  0xc4   :  { %2182 = vmatpush.bf16.msrb.mxu2 %v1760_v3 }
  0xc6   :  { %619 = vmatpush.bf16.msrb.mxu0 %v1760_v3 }
 0x10b   :  { %v175_v47 = vpop.xlane.xlu2 %174  ;;  %v179_v53 = vpop.xlane.xlu0 %178 }
 0x10c   :  { %v182_v52 = vmul.f32 %v175_v47, %v2580_v10  ;;  %v184_v61 = vmul.f32 %v179_v53, %v2580_v10  ;;  %v1812_v47 = vor.u32 %v2107_v41, %v1809_v42 }
 0x10e   :  { %v2603_v58 = vadd.f32 1e-05, %v182_v52  ;;  %v2607_v8 = vadd.f32 1e-05, %v184_v61  ;;  %636 = vmatpush.bf16.msrb.mxu1 %v1812_v47  ;;  %2188 = vmatpush.bf16.msrb.mxu3 %v1812_v47  ;;  %v1785_v61 = vld [vmem:[#allocation7 + $0xb8] sm:$0xf0] }
 0x10f   :  { %v1788_v0 = vor.u32 %v2101_v57, %v1785_v61 }
 0x110   :  { %2215 = vrsqrt.f32 %v2603_v58  ;;  %vm196_vm2 = vweird.f32 %v2603_v58  ;;  %vm216_vm9 = vweird.f32 %v2607_v8 }
 0x111   :  { %2217 = vrsqrt.f32 %v2607_v8 }
 0x112   :  { %637 = vmatpush.bf16.msrb.mxu1 %v1788_v0  ;;  %2189 = vmatpush.bf16.msrb.mxu3 %v1788_v0 }
 0x113   :  { %v181_v9 = vpop.xlane.xlu1 %180  ;;  %v177_v11 = vpop.xlane.xlu2 %176 }
 0x114   :  { %v185_v14 = vmul.f32 %v181_v9, %v2580_v10  ;;  %v183_v17 = vmul.f32 %v177_v11, %v2580_v10  ;;  %v1764_v9 = vor.u32 %v2095_v4, %v1761_v5  ;;  %v1735_v11 = vld [vmem:[#allocation7 + $0x40] sm:$0xf] }
 0x115   :  { %v1736_v21 = vor.u32 %v2092_v12, %v1735_v11 }
 0x116   :  { %v2611_v27 = vpop.eup %2215  ;;  %v2613_v28 = vadd.f32 1e-05, %v185_v14  ;;  %v2615_v29 = vadd.f32 1e-05, %v183_v17  ;;  %v2089_v17 = vld [vmem:[#allocation7 + $0x44] sm:$0xf]  ;;  %638 = vmatpush.bf16.msrb.mxu1 %v1764_v9  ;;  %2190 = vmatpush.bf16.msrb.mxu3 %v1764_v9 }
 0x117   :  { %v191_v32 = vmul.f32 %v2611_v27, %v2603_v58  ;;  %v2623_v43 = vpop.eup %2217  ;;  %vm197_vm1 = vweird.f32 %v2611_v27  ;;  %v1740_v26 = vor.u32 %v2089_v17, %v1737_v18  ;;  %620 = vmatpush.bf16.msrb.mxu0 %v1736_v21  ;;  %2183 = vmatpush.bf16.msrb.mxu2 %v1736_v21 }
 0x118   :  { %2219 = vrsqrt.f32 %v2613_v28  ;;  %v211_v51 = vmul.f32 %v2623_v43, %v2607_v8  ;;  %vm2636_vm3 = vmor %vm196_vm2, %vm197_vm1  ;;  %vm206_vm5 = vweird.f32 %v2615_v29  ;;  %vm226_vm7 = vweird.f32 %v2613_v28 }
 0x119   :  { %v192_v35 = vmul.f32 %v2611_v27, %v191_v32  ;;  %2221 = vrsqrt.f32 %v2615_v29  ;;  %vm217_vm10 = vweird.f32 %v2623_v43 }
 0x11a   :  { %v212_v58 = vmul.f32 %v2623_v43, %v211_v51  ;;  %639 = vmatpush.bf16.msrb.mxu1 %v1740_v26  ;;  %2191 = vmatpush.bf16.msrb.mxu3 %v1740_v26  ;;  %vm218_vm12 = vmor %vm216_vm9, %vm217_vm10 }
 0x11b   :  { %v193_v40 = vmul.f32 0.5, %v192_v35 }
 0x11c   :  { %v213_v19 = vmul.f32 0.5, %v212_v58 }
 0x11d   :  { %v194_v44 = vsub.f32 1.5, %v193_v40 }
 0x11e   :  { %v2625_v46 = vpop.eup %2219  ;;  %v214_v34 = vsub.f32 1.5, %v213_v19 }
 0x11f   :  { %v2222_v48 = vpop.eup %2221  ;;  %v221_v49 = vmul.f32 %v2625_v46, %v2613_v28  ;;  %v195_v50 = vmul.f32 %v2611_v27, %v194_v44  ;;  %vm227_vm8 = vweird.f32 %v2625_v46 }
 0x120   :  { %v201_v52 = vmul.f32 %v2222_v48, %v2615_v29  ;;  %vm207_vm4 = vweird.f32 %v2222_v48  ;;  %v1713_v29 = vld [vmem:[#allocation7 + $0x28] sm:$0xf0]  ;;  %vm228_vm11 = vmor %vm226_vm7, %vm227_vm8  ;;  %v215_v28 = vmul.f32 %v2623_v43, %v214_v34 }
 0x121   :  { %v222_v53 = vmul.f32 %v2625_v46, %v221_v49  ;;  %v199_v62 = vsel %vm2636_vm3, %v2611_v27, %v195_v50  ;;  %vm208_vm6 = vmor %vm206_vm5, %vm207_vm4  ;;  %v1711_v27 = vld [vmem:[#allocation7 + $0x10] sm:$0xf] }
 0x122   :  { %v202_v54 = vmul.f32 %v2222_v48, %v201_v52  ;;  %v230_v14 = vmul.f32 %v199_v62, %v2586_v16  ;;  %v2208_v16 = vld [vmem:[%s2762_s2] ss:$0 sm:$0xff]  ;;  %v1712_v36 = vor.u32 %v2086_v30, %v1711_v27  ;;  %v219_v8 = vsel %vm218_vm12, %v2623_v43, %v215_v28 }
 0x123   :  { %v223_v6 = vmul.f32 0.5, %v222_v53  ;;  %v232_v44 = vmul.f32 %v219_v8, %v2584_v15 }
 0x124   :  { %v203_v63 = vmul.f32 0.5, %v202_v54  ;;  %v237_v31 = vmul.f32 %v2207_v13, %v230_v14  ;;  %621 = vmatpush.bf16.msrb.mxu0 %v1712_v36  ;;  %2184 = vmatpush.bf16.msrb.mxu2 %v1712_v36 }
 0x125   :  { %v224_v22 = vsub.f32 1.5, %v223_v6  ;;  %v239_v47 = vmul.f32 %v2207_v13, %v232_v44 }
 0x126   :  { %v204_v7 = vsub.f32 1.5, %v203_v63  ;;  %v244_v38 = vadd.f32 %v2208_v16, %v237_v31 }
 0x127   :  { %v225_v37 = vmul.f32 %v2625_v46, %v224_v22  ;;  %v246_v49 = vadd.f32 %v2208_v16, %v239_v47 }
 0x128   :  { %v205_v20 = vmul.f32 %v2222_v48, %v204_v7 }
 0x129   :  { %v229_v41 = vsel %vm228_vm11, %v2625_v46, %v225_v37 }
 0x12a   :  { %v209_v25 = vsel %vm208_vm6, %v2222_v48, %v205_v20  ;;  %v233_v42 = vmul.f32 %v229_v41, %v2594_v23 }
 0x12b   :  { %v231_v32 = vmul.f32 %v209_v25, %v2596_v24  ;;  %v1716_v24 = vor.u32 %v2083_v33, %v1713_v29 }
 0x12c   :  { %v240_v45 = vmul.f32 %v2207_v13, %v233_v42 }
 0x12d   :  { %v238_v35 = vmul.f32 %v2207_v13, %v231_v32  ;;  %640 = vmatpush.bf16.msrb.mxu1 %v1716_v24  ;;  %2192 = vmatpush.bf16.msrb.mxu3 %v1716_v24 }
 0x12e   :  { %v247_v48 = vadd.f32 %v2208_v16, %v240_v45 }
 0x12f   :  { %v245_v39 = vadd.f32 %v2208_v16, %v238_v35 }
 0x130   :  { %v249_v50 = vpack.c.bf16 %v247_v48, %v246_v49 }
 0x131   :  { %v248_v40 = vpack.c.bf16 %v245_v39, %v244_v38 }
 0x133   :  { %546 = vmatmul.bf16.vlgmr.msra.gmra.mxu0 %v248_v40  ;;  %565 = vmatmul.bf16.vlgmr.msra.gmra.mxu1 %v248_v40 }
 0x134   :  { %584 = vmatmul.bf16.vlgmr.msra.gmra.mxu2 %v248_v40  ;;  %603 = vmatmul.bf16.vlgmr.msra.gmra.mxu3 %v248_v40 }
 0x143   :  { %551 = vmatmul.bf16.gmra.mxu0 %v249_v50  ;;  %570 = vmatmul.bf16.gmra.mxu1 %v249_v50 }
 0x144   :  { %589 = vmatmul.bf16.gmra.mxu2 %v249_v50  ;;  %608 = vmatmul.bf16.gmra.mxu3 %v249_v50 }
 0x153   :  { %622 = vmatmul.bf16.vlgmr.msrb.gmra.mxu0 %v248_v40  ;;  %641 = vmatmul.bf16.vlgmr.msrb.gmra.mxu1 %v248_v40 }
 0x154   :  { %627 = vmatmul.bf16.vlgmr.msrb.gmra.mxu2 %v249_v50  ;;  %646 = vmatmul.bf16.vlgmr.msrb.gmra.mxu3 %v249_v50 }
 0x1b0   :  { %v547_v43 = vpop.f32.mrf.mxu0  ;;  %v566_v46 = vpop.f32.mrf.mxu1 }
 0x1b1   :  { %v652_v5 = vpack.c.bf16 %v547_v43, %v547_v43  ;;  %v843_v6 = vpack.c.bf16 %v566_v46, %v566_v46 }
 0x1b3   :  { %v666_v17 = vunpack.c.l.b16 %v652_v5  ;;  %v857_v18 = vunpack.c.l.b16 %v843_v6 }
 0x1b7   :  { %v585_v51 = vpop.f32.mrf.mxu2  ;;  %v604_v52 = vpop.f32.mrf.mxu3 }
 0x1b8   :  { %v549_v23 = vpop.f32.mrf.mxu0  ;;  %v568_v53 = vpop.f32.mrf.mxu1  ;;  %v656_v15 = vpack.c.bf16 %v585_v51, %v585_v51  ;;  %v847_v54 = vpack.c.bf16 %v604_v52, %v604_v52 }
 0x1b9   :  { %v653_v1 = vpack.c.bf16 %v549_v23, %v549_v23  ;;  %v844_v2 = vpack.c.bf16 %v568_v53, %v568_v53 }
 0x1ba   :  { %v672_v62 = vunpack.c.l.b16 %v656_v15  ;;  %v863_v58 = vunpack.c.l.b16 %v847_v54 }
 0x1bb   :  { %v667_v7 = vunpack.c.l.b16 %v653_v1  ;;  %v858_v9 = vunpack.c.l.b16 %v844_v2 }
 0x1bd   :  { %v668_v19 = vpack.c.b16 %v667_v7, %v666_v17  ;;  %v859_v20 = vpack.c.b16 %v858_v9, %v857_v18 }
 0x1bf   :  { %v587_v55 = vpop.f32.mrf.mxu2  ;;  %v606_v56 = vpop.f32.mrf.mxu3 }
 0x1c0   :  { %v657_v57 = vpack.c.bf16 %v587_v55, %v587_v55  ;;  %v848_v59 = vpack.c.bf16 %v606_v56, %v606_v56  ;;  %v552_v60 = vpop.f32.mrf.mxu0  ;;  %v571_v61 = vpop.f32.mrf.mxu1 }
 0x1c1   :  { %v654_v37 = vpack.c.bf16 %v552_v60, %v552_v60  ;;  %v845_v24 = vpack.c.bf16 %v571_v61, %v571_v61 }
 0x1c2   :  { %v673_v63 = vunpack.c.l.b16 %v657_v57  ;;  %v864_v0 = vunpack.c.l.b16 %v848_v59 }
 0x1c3   :  { %v692_v45 = vunpack.c.l.b16 %v654_v37  ;;  %v883_v47 = vunpack.c.l.b16 %v845_v24 }
 0x1c4   :  { %v674_v3 = vpack.c.b16 %v673_v63, %v672_v62  ;;  %v865_v4 = vpack.c.b16 %v864_v0, %v863_v58 }
 0x1c6   :  { %683 = vmatpush.bf16.xpose.msra.mxu2 %v674_v3  ;;  %874 = vmatpush.bf16.xpose.msra.mxu0 %v865_v4 }
 0x1c7   :  { %v590_v11 = vpop.f32.mrf.mxu2  ;;  %v609_v12 = vpop.f32.mrf.mxu3 }
 0x1c8   :  { %v554_v13 = vpop.f32.mrf.mxu0  ;;  %v573_v14 = vpop.f32.mrf.mxu1  ;;  %v658_v21 = vpack.c.bf16 %v590_v11, %v590_v11  ;;  %v849_v22 = vpack.c.bf16 %v609_v12, %v609_v12 }
 0x1c9   :  { %v655_v32 = vpack.c.bf16 %v554_v13, %v554_v13  ;;  %v846_v33 = vpack.c.bf16 %v573_v14, %v573_v14 }
 0x1ca   :  { %v698_v29 = vunpack.c.l.b16 %v658_v21  ;;  %v889_v34 = vunpack.c.l.b16 %v849_v22 }
 0x1cb   :  { %v693_v28 = vunpack.c.l.b16 %v655_v32  ;;  %v884_v40 = vunpack.c.l.b16 %v846_v33 }
 0x1cd   :  { %684 = vmatmul.bf16.vlgmr.msra.gmra.mxu2 %v668_v19  ;;  %875 = vmatmul.bf16.vlgmr.msra.gmra.mxu0 %v859_v20  ;;  %v694_v46 = vpack.c.b16 %v693_v28, %v692_v45  ;;  %v885_v51 = vpack.c.b16 %v884_v40, %v883_v47 }
 0x1cf   :  { %v592_v25 = vpop.f32.mrf.mxu2  ;;  %v611_v26 = vpop.f32.mrf.mxu3 }
 0x1d0   :  { %v659_v27 = vpack.c.bf16 %v592_v25, %v592_v25  ;;  %v850_v30 = vpack.c.bf16 %v611_v26, %v611_v26  ;;  %v623_v16 = vpop.f32.mrf.mxu0  ;;  %v642_v31 = vpop.f32.mrf.mxu1 }
 0x1d1   :  { %v660_v41 = vpack.c.bf16 %v623_v16, %v623_v16  ;;  %v851_v8 = vpack.c.bf16 %v642_v31, %v642_v31 }
 0x1d2   :  { %v699_v35 = vunpack.c.l.b16 %v659_v27  ;;  %v890_v36 = vunpack.c.l.b16 %v850_v30 }
 0x1d3   :  { %v776_v52 = vunpack.c.l.b16 %v660_v41  ;;  %v966_v23 = vunpack.c.l.b16 %v851_v8 }
 0x1d4   :  { %v700_v38 = vpack.c.b16 %v699_v35, %v698_v29  ;;  %v891_v39 = vpack.c.b16 %v890_v36, %v889_v34 }
 0x1d6   :  { %709 = vmatpush.bf16.xpose.msra.mxu3 %v700_v38  ;;  %900 = vmatpush.bf16.xpose.msra.mxu1 %v891_v39 }
 0x1d7   :  { %v628_v42 = vpop.f32.mrf.mxu2  ;;  %v647_v44 = vpop.f32.mrf.mxu3 }
 0x1d8   :  { %v625_v48 = vpop.f32.mrf.mxu0  ;;  %v644_v49 = vpop.f32.mrf.mxu1  ;;  %v662_v56 = vpack.c.bf16 %v628_v42, %v628_v42  ;;  %v853_v57 = vpack.c.bf16 %v647_v44, %v647_v44 }
 0x1d9   :  { %v661_v50 = vpack.c.bf16 %v625_v48, %v625_v48  ;;  %v852_v43 = vpack.c.bf16 %v644_v49, %v644_v49 }
 0x1da   :  { %v804_v58 = vunpack.c.l.b16 %v662_v56  ;;  %v994_v63 = vunpack.c.l.b16 %v853_v57 }
 0x1db   :  { %v777_v53 = vunpack.c.l.b16 %v661_v50  ;;  %v967_v15 = vunpack.c.l.b16 %v852_v43 }
 0x1dd   :  { %v778_v54 = vpack.c.b16 %v777_v53, %v776_v52  ;;  %v968_v55 = vpack.c.b16 %v967_v15, %v966_v23  ;;  %710 = vmatmul.bf16.vlgmr.msra.gmra.mxu3 %v694_v46  ;;  %901 = vmatmul.bf16.vlgmr.msra.gmra.mxu1 %v885_v51 }
 0x1df   :  { %v630_v59 = vpop.f32.mrf.mxu2  ;;  %v649_v60 = vpop.f32.mrf.mxu3  ;;  %790 = vmatpush.bf16.msrb.mxu2 %v778_v54 }
 0x1e0   :  { %v663_v61 = vpack.c.bf16 %v630_v59, %v630_v59  ;;  %v854_v62 = vpack.c.bf16 %v649_v60, %v649_v60 }
 0x1e2   :  { %v805_v0 = vunpack.c.l.b16 %v663_v61  ;;  %v995_v1 = vunpack.c.l.b16 %v854_v62 }
 0x1e3   :  { %980 = vmatpush.bf16.msra.mxu2 %v968_v55 }
 0x1e4   :  { %v806_v2 = vpack.c.b16 %v805_v0, %v804_v58  ;;  %v996_v3 = vpack.c.b16 %v995_v1, %v994_v63 }
 0x1e6   :  { %818 = vmatpush.bf16.msrb.mxu3 %v806_v2 }
 0x1ea   :  { %1008 = vmatpush.bf16.msra.mxu3 %v996_v3 }
 0x24a   :  { %v876_v12 = vpop.f32.mrf.mxu0 }
 0x24b   :  { %v907_v14 = vmul.f32 0.088388346, %v876_v12 }
 0x24d   :  { %v911_v20 = vsel %vm720_vm13, %v907_v14, -inf }
 0x250   :  { %v685_v4 = vpop.f32.mrf.mxu2 }
 0x251   :  { %v716_v5 = vmul.f32 0.088388346, %v685_v4 }
 0x252   :  { %v878_v22 = vpop.f32.mrf.mxu0 }
 0x253   :  { %v721_v6 = vsel %vm720_vm13, %v716_v5, -inf  ;;  %v908_v26 = vmul.f32 0.088388346, %v878_v22 }
 0x254   :  { %722 = vmax.xlane.f32.xlu2 %v721_v6 }
 0x255   :  { %v914_v32 = vsel %vm720_vm13, %v908_v26, -inf }
 0x258   :  { %v687_v7 = vpop.f32.mrf.mxu2 }
 0x259   :  { %v717_v9 = vmul.f32 0.088388346, %v687_v7 }
 0x25a   :  { %v902_v11 = vpop.f32.mrf.mxu1 }
 0x25b   :  { %v724_v13 = vsel %vm720_vm13, %v717_v9, -inf  ;;  %v909_v33 = vmul.f32 0.088388346, %v902_v11 }
 0x25c   :  { %725 = vmax.xlane.f32.xlu0 %v724_v13 }
 0x25d   :  { %v917_v29 = vsel %vm720_vm13, %v909_v33, -inf }
 0x260   :  { %v711_v17 = vpop.f32.mrf.mxu3 }
 0x261   :  { %v718_v18 = vmul.f32 0.088388346, %v711_v17 }
 0x262   :  { %v904_v21 = vpop.f32.mrf.mxu1 }
 0x263   :  { %v727_v19 = vsel %vm720_vm13, %v718_v18, -inf  ;;  %v910_v25 = vmul.f32 0.088388346, %v904_v21 }
 0x264   :  { %728 = vmax.xlane.f32.xlu1 %v727_v19  ;;  %912 = vmax.xlane.f32.xlu0 %v911_v20 }
 0x265   :  { %v920_v31 = vsel %vm720_vm13, %v910_v25, -inf }
 0x268   :  { %v713_v27 = vpop.f32.mrf.mxu3 }
 0x269   :  { %v719_v30 = vmul.f32 0.088388346, %v713_v27  ;;  %v2144_v27 = vld [vmem:[#allocation8 + $0x78] sm:$0xff] }
 0x26a   :  { %1081 = vmatpush.bf16.msrb.mxu0 %v2144_v27 }
 0x26b   :  { %v730_v16 = vsel %vm720_vm13, %v719_v30, -inf }
 0x26c   :  { %731 = vmax.xlane.f32.xlu2 %v730_v16  ;;  %921 = vmax.xlane.f32.xlu0 %v920_v31  ;;  %v2135_v16 = vld [vmem:[#allocation8 + $0x30] sm:$0xff] }
 0x26d   :  { %915 = vmax.xlane.f32.xlu1 %v914_v32 }
 0x274   :  { %918 = vmax.xlane.f32.xlu2 %v917_v29  ;;  %v2134_v29 = vld [vmem:[#allocation8 + $0x28] sm:$0xff] }
 0x2c7   :  { %v723_v34 = vpop.xlane.xlu2 %722 }
 0x2c8   :  { %v733_v35 = vsub.f32 %v716_v5, %v723_v34 }
 0x2ca   :  { %v737_v36 = vmul.f32 1.442695, %v733_v35 }
 0x2cc   :  { %2223 = vpow2.f32 %v737_v36 }
 0x2cf   :  { %v726_v37 = vpop.xlane.xlu0 %725 }
 0x2d0   :  { %v734_v24 = vsub.f32 %v717_v9, %v726_v37 }
 0x2d2   :  { %v2224_v38 = vpop.eup %2223  ;;  %v739_v39 = vmul.f32 1.442695, %v734_v24 }
 0x2d3   :  { %v745_v28 = vsel %vm720_vm13, %v2224_v38, 0.0 }
 0x2d4   :  { %2225 = vpow2.f32 %v739_v39  ;;  %746 = vadd.xlane.f32.xlu1 %v745_v28 }
 0x2d7   :  { %v729_v40 = vpop.xlane.xlu1 %728  ;;  %v913_v41 = vpop.xlane.xlu0 %912 }
 0x2d8   :  { %v735_v8 = vsub.f32 %v718_v18, %v729_v40  ;;  %v923_v42 = vsub.f32 %v907_v14, %v913_v41  ;;  %v2133_v41 = vld [vmem:[#allocation8 + $0x20] sm:$0xff] }
 0x2da   :  { %v2226_v44 = vpop.eup %2225  ;;  %v741_v45 = vmul.f32 1.442695, %v735_v8  ;;  %v927_v47 = vmul.f32 1.442695, %v923_v42 }
 0x2db   :  { %v748_v48 = vsel %vm720_vm13, %v2226_v44, 0.0 }
 0x2dc   :  { %2227 = vpow2.f32 %v741_v45  ;;  %749 = vadd.xlane.f32.xlu2 %v748_v48 }
 0x2dd   :  { %2229 = vpow2.f32 %v927_v47 }
 0x2df   :  { %v732_v49 = vpop.xlane.xlu2 %731  ;;  %v922_v50 = vpop.xlane.xlu0 %921 }
 0x2e0   :  { %v736_v43 = vsub.f32 %v719_v30, %v732_v49  ;;  %v926_v46 = vsub.f32 %v910_v25, %v922_v50  ;;  %v916_v51 = vpop.xlane.xlu1 %915  ;;  %v2136_v25 = vld [vmem:[#allocation8 + $0x38] sm:$0xff] }
 0x2e1   :  { %v924_v52 = vsub.f32 %v908_v26, %v916_v51  ;;  %1148 = vmatpush.bf16.msrb.mxu1 %v2136_v25  ;;  %v2132_v49 = vld [vmem:[#allocation8 + $0x18] sm:$0xff] }
 0x2e2   :  { %v2228_v23 = vpop.eup %2227  ;;  %v743_v53 = vmul.f32 1.442695, %v736_v43  ;;  %v933_v15 = vmul.f32 1.442695, %v926_v46 }
 0x2e3   :  { %v2230_v54 = vpop.eup %2229  ;;  %v929_v55 = vmul.f32 1.442695, %v924_v52  ;;  %v751_v56 = vsel %vm720_vm13, %v2228_v23, 0.0 }
 0x2e4   :  { %2231 = vpow2.f32 %v743_v53  ;;  %752 = vadd.xlane.f32.xlu0 %v751_v56  ;;  %v935_v57 = vsel %vm720_vm13, %v2230_v54, 0.0  ;;  %v2143_v56 = vld [vmem:[#allocation8 + $0x70] sm:$0xff] }
 0x2e5   :  { %2233 = vpow2.f32 %v933_v15  ;;  %936 = vadd.xlane.f32.xlu2 %v935_v57  ;;  %1149 = vmatpush.bf16.msrb.mxu1 %v2135_v16  ;;  %v2131_v57 = vld [vmem:[#allocation8 + $0x10] sm:$0xff] }
 0x2e6   :  { %2235 = vpow2.f32 %v929_v55  ;;  %1082 = vmatpush.bf16.msrb.mxu0 %v2143_v56  ;;  %v2011_v56 = vld [vmem:[#allocation10 + $0x70] sm:$0xf] }
 0x2e7   :  { %v919_v59 = vpop.xlane.xlu2 %918 }
 0x2e8   :  { %v925_v60 = vsub.f32 %v909_v33, %v919_v59  ;;  %v2142_v59 = vld [vmem:[#allocation8 + $0x68] sm:$0xff] }
 0x2e9   :  { %1150 = vmatpush.bf16.msrb.mxu1 %v2134_v29 }
 0x2ea   :  { %v2232_v61 = vpop.eup %2231  ;;  %v931_v62 = vmul.f32 1.442695, %v925_v60  ;;  %v2130_v60 = vld [vmem:[#allocation8 + $0x8] sm:$0xff]  ;;  %1083 = vmatpush.bf16.msrb.mxu0 %v2142_v59  ;;  %v2159_v59 = vld [vmem:[#allocation10 + $0x74] sm:$0xf] }
 0x2eb   :  { %v2672_v58 = vpop.eup %2233  ;;  %v754_v63 = vsel %vm720_vm13, %v2232_v61, 0.0 }
 0x2ec   :  { %v2236_v0 = vpop.eup %2235  ;;  %2237 = vpow2.f32 %v931_v62  ;;  %v944_v1 = vsel %vm720_vm13, %v2672_v58, 0.0  ;;  %755 = vadd.xlane.f32.xlu1 %v754_v63  ;;  %v2129_v62 = vld [vmem:[#allocation8] sm:$0xff]  ;;  %v2139_v63 = vld [vmem:[#allocation8 + $0x50] sm:$0xff] }
 0x2ed   :  { %945 = vadd.xlane.f32.xlu2 %v944_v1  ;;  %v938_v2 = vsel %vm720_vm13, %v2236_v0, 0.0  ;;  %1151 = vmatpush.bf16.msrb.mxu1 %v2133_v41  ;;  %v2137_v1 = vld [vmem:[#allocation8 + $0x40] sm:$0xff]  ;;  %v2282_v41 = vld [vmem:[#allocation2 + $0x18] sm:$0xff] }
 0x2ee   :  { %939 = vadd.xlane.f32.xlu0 %v938_v2 }
 0x2f1   :  { %1152 = vmatpush.bf16.msrb.mxu1 %v2132_v49 }
 0x2f2   :  { %v2238_v3 = vpop.eup %2237 }
 0x2f3   :  { %v941_v4 = vsel %vm720_vm13, %v2238_v3, 0.0 }
 0x2f4   :  { %942 = vadd.xlane.f32.xlu1 %v941_v4 }
 0x2f5   :  { %1153 = vmatpush.bf16.msrb.mxu1 %v2131_v57  ;;  %v2160_v57 = vld [vmem:[#allocation10 + $0x74] sm:$0xf0] }
 0x2f9   :  { %1154 = vmatpush.bf16.msrb.mxu1 %v2130_v60  ;;  %v2012_v60 = vor.u32 %v2160_v57, %v2011_v56 }
 0x2fd   :  { %1155 = vmatpush.bf16.msrb.mxu1 %v2129_v62 }
 0x347   :  { %v747_v5 = vpop.xlane.xlu1 %746 }
 0x348   :  { %2239 = vrcp.f32 %v747_v5 }
 0x34e   :  { %v2240_v7 = vpop.eup %2239 }
 0x34f   :  { %v750_v6 = vpop.xlane.xlu2 %749  ;;  %v761_v9 = vmul.f32 %v2240_v7, %v2224_v38 }
 0x350   :  { %2241 = vrcp.f32 %v750_v6 }
 0x351   :  { %v765_v12 = vpack.c.bf16 %v761_v9, %v761_v9 }
 0x353   :  { %v771_v19 = vunpack.c.l.b16 %v765_v12 }
 0x356   :  { %v2242_v11 = vpop.eup %2241 }
 0x357   :  { %v762_v13 = vmul.f32 %v2242_v11, %v2226_v44  ;;  %v753_v14 = vpop.xlane.xlu0 %752 }
 0x358   :  { %v937_v18 = vpop.xlane.xlu2 %936  ;;  %2243 = vrcp.f32 %v753_v14 }
 0x359   :  { %v766_v17 = vpack.c.bf16 %v762_v13, %v762_v13  ;;  %2245 = vrcp.f32 %v937_v18 }
 0x35b   :  { %v772_v20 = vunpack.c.l.b16 %v766_v17 }
 0x35d   :  { %v773_v21 = vpack.c.b16 %v772_v20, %v771_v19  ;;  %v2209_v19 = vld [vmem:[%s2765_s5] ss:$0 sm:$0xff] }
 0x35e   :  { %v2244_v26 = vpop.eup %2243 }
 0x35f   :  { %v756_v22 = vpop.xlane.xlu1 %755  ;;  %1885 = vmatmul.msk.bf16.vlgmr.msrb.gmra.mxu2 %vm720_vm13, %v773_v21  ;;  %v2246_v31 = vpop.eup %2245  ;;  %v763_v32 = vmul.f32 %v2244_v26, %v2228_v23  ;;  %v2279_v26 = vld [vmem:[#allocation2] sm:$0xff] }
 0x360   :  { %2247 = vrcp.f32 %v756_v22  ;;  %v951_v33 = vmul.f32 %v2246_v31, %v2230_v54  ;;  %v946_v36 = vpop.xlane.xlu2 %945  ;;  %1379 = vmatpush.bf16.msrb.mxu2 %v2012_v60 }
 0x361   :  { %v940_v30 = vpop.xlane.xlu0 %939  ;;  %v767_v35 = vpack.c.bf16 %v763_v32, %v763_v32  ;;  %v2280_v32 = vld [vmem:[#allocation2 + $0x8] sm:$0xff] }
 0x362   :  { %2249 = vrcp.f32 %v940_v30  ;;  %v955_v39 = vpack.c.bf16 %v951_v33, %v951_v33 }
 0x363   :  { %v799_v8 = vunpack.c.l.b16 %v767_v35 }
 0x364   :  { %v961_v45 = vunpack.c.l.b16 %v955_v39 }
 0x366   :  { %v2248_v34 = vpop.eup %2247 }
 0x367   :  { %v764_v37 = vmul.f32 %v2248_v34, %v2232_v61  ;;  %v943_v24 = vpop.xlane.xlu1 %942  ;;  %v2141_v61 = vld [vmem:[#allocation8 + $0x60] sm:$0xff] }
 0x368   :  { %v2250_v38 = vpop.eup %2249  ;;  %2251 = vrcp.f32 %v943_v24  ;;  %1084 = vmatpush.bf16.msrb.mxu0 %v2141_v61  ;;  %v2013_v61 = vld [vmem:[#allocation10 + $0x78] sm:$0xf0] }
 0x369   :  { %v952_v28 = vmul.f32 %v2250_v38, %v2236_v0  ;;  %v768_v40 = vpack.c.bf16 %v764_v37, %v764_v37  ;;  %2253 = vrcp.f32 %v946_v36  ;;  %v2138_v0 = vld [vmem:[#allocation8 + $0x48] sm:$0xff]  ;;  %v2016_v62 = vor.u32 %v2159_v59, %v2013_v61 }
 0x36a   :  { %v2281_v37 = vld [vmem:[#allocation2 + $0x10] sm:$0xff] }
 0x36b   :  { %v956_v42 = vpack.c.bf16 %v952_v28, %v952_v28  ;;  %v800_v44 = vunpack.c.l.b16 %v768_v40 }
 0x36d   :  { %v962_v47 = vunpack.c.l.b16 %v956_v42  ;;  %v801_v48 = vpack.c.b16 %v800_v44, %v799_v8 }
 0x36e   :  { %v2252_v50 = vpop.eup %2251 }
 0x36f   :  { %v963_v43 = vpack.c.b16 %v962_v47, %v961_v45  ;;  %1886 = vmatmul.msk.bf16.vlgmr.msrb.gmra.mxu3 %vm720_vm13, %v801_v48  ;;  %v2254_v46 = vpop.eup %2253  ;;  %v953_v51 = vmul.f32 %v2252_v50, %v2238_v3 }
 0x370   :  { %v954_v52 = vmul.f32 %v2254_v46, %v2672_v58  ;;  %v2140_v58 = vld [vmem:[#allocation8 + $0x58] sm:$0xff]  ;;  %1398 = vmatpush.bf16.msrb.mxu3 %v2016_v62 }
 0x371   :  { %1887 = vmatmul.msk.bf16.vlgmr.msra.gmra.mxu2 %vm720_vm13, %v963_v43  ;;  %v957_v23 = vpack.c.bf16 %v953_v51, %v953_v51  ;;  %1085 = vmatpush.bf16.msrb.mxu0 %v2140_v58  ;;  %v2003_v58 = vld [vmem:[#allocation10 + $0x60] sm:$0xf] }
 0x372   :  { %v958_v53 = vpack.c.bf16 %v954_v52, %v954_v52 }
 0x373   :  { %v989_v15 = vunpack.c.l.b16 %v957_v23 }
 0x374   :  { %v990_v54 = vunpack.c.l.b16 %v958_v53 }
 0x375   :  { %1086 = vmatpush.bf16.msrb.mxu0 %v2139_v63  ;;  %v2158_v63 = vld [vmem:[#allocation10 + $0x64] sm:$0xf0] }
 0x376   :  { %v991_v55 = vpack.c.b16 %v990_v54, %v989_v15 }
 0x379   :  { %1087 = vmatpush.bf16.msrb.mxu0 %v2138_v0  ;;  %v2157_v0 = vld [vmem:[#allocation10 + $0x64] sm:$0xf] }
 0x37d   :  { %1088 = vmatpush.bf16.msrb.mxu0 %v2137_v1  ;;  %v2004_v1 = vor.u32 %v2158_v63, %v2003_v58 }
 0x37f   :  { %1888 = vmatmul.msk.bf16.vlgmr.msra.gmra.mxu3 %vm720_vm13, %v991_v55  ;;  %1380 = vmatpush.bf16.msrb.mxu2 %v2004_v1 }
 0x3e2   :  { %v792_v2 = vpop.f32.mrf.mxu2 }
 0x3ea   :  { %v794_v3 = vpop.f32.mrf.mxu2 }
 0x3eb   :  { %v825_v4 = vpack.c.bf16 %v794_v3, %v792_v2  ;;  %v2005_v2 = vld [vmem:[#allocation10 + $0x68] sm:$0xf0] }
 0x3ec   :  { %v2008_v3 = vor.u32 %v2157_v0, %v2005_v2 }
 0x3ed   :  { %1156 = vmatmul.bf16.vlgmr.msrb.gmra.mxu1 %v825_v4  ;;  %v1995_v4 = vld [vmem:[#allocation10 + $0x50] sm:$0xf] }
 0x3ee   :  { %1399 = vmatpush.bf16.msrb.mxu3 %v2008_v3 }
 0x3f2   :  { %v820_v5 = vpop.f32.mrf.mxu3 }
 0x3f4   :  { %v982_v6 = vpop.f32.mrf.mxu2 }
 0x3fa   :  { %v822_v7 = vpop.f32.mrf.mxu3 }
 0x3fb   :  { %v826_v9 = vpack.c.bf16 %v822_v7, %v820_v5  ;;  %v2156_v5 = vld [vmem:[#allocation10 + $0x54] sm:$0xf0] }
 0x3fc   :  { %v984_v11 = vpop.f32.mrf.mxu2  ;;  %v1996_v7 = vor.u32 %v2156_v5, %v1995_v4 }
 0x3fd   :  { %v1015_v12 = vpack.c.bf16 %v984_v11, %v982_v6  ;;  %1161 = vmatmul.bf16.gmra.mxu1 %v826_v9  ;;  %v2155_v6 = vld [vmem:[#allocation10 + $0x54] sm:$0xf]  ;;  %v1997_v9 = vld [vmem:[#allocation10 + $0x58] sm:$0xf0] }
 0x3fe   :  { %v2000_v11 = vor.u32 %v2155_v6, %v1997_v9  ;;  %1381 = vmatpush.bf16.msrb.mxu2 %v1996_v7 }
 0x3ff   :  { %1089 = vmatmul.bf16.vlgmr.msrb.gmra.mxu0 %v1015_v12  ;;  %v1987_v12 = vld [vmem:[#allocation10 + $0x40] sm:$0xf] }
 0x400   :  { %1400 = vmatpush.bf16.msrb.mxu3 %v2000_v11 }
 0x402   :  { %v1010_v13 = vpop.f32.mrf.mxu3 }
 0x40a   :  { %v1012_v14 = vpop.f32.mrf.mxu3 }
 0x40b   :  { %v1016_v17 = vpack.c.bf16 %v1012_v14, %v1010_v13  ;;  %v2154_v13 = vld [vmem:[#allocation10 + $0x44] sm:$0xf0]  ;;  %v2153_v14 = vld [vmem:[#allocation10 + $0x44] sm:$0xf] }
 0x40f   :  { %1094 = vmatmul.bf16.gmra.mxu0 %v1016_v17  ;;  %v1988_v17 = vor.u32 %v2154_v13, %v1987_v12  ;;  %v2210_v13 = vld [vmem:[%s2766_s6] ss:$0 sm:$0xff] }
 0x411   :  { %1382 = vmatpush.bf16.msrb.mxu2 %v1988_v17 }
 0x46a   :  { %v1157_v18 = vpop.f32.mrf.mxu1 }
 0x472   :  { %v1159_v25 = vpop.f32.mrf.mxu1 }
 0x47a   :  { %v1162_v29 = vpop.f32.mrf.mxu1 }
 0x47c   :  { %v1090_v20 = vpop.f32.mrf.mxu0 }
 0x47d   :  { %v1158_v21 = vadd.f32 %v1157_v18, %v1090_v20  ;;  %v1989_v18 = vld [vmem:[#allocation10 + $0x48] sm:$0xf0]  ;;  %v1979_v20 = vld [vmem:[#allocation10 + $0x30] sm:$0xf] }
 0x47f   :  { %v1171_v22 = vadd.f32 %v2209_v19, %v1158_v21  ;;  %v2152_v21 = vld [vmem:[#allocation10 + $0x34] sm:$0xf0] }
 0x481   :  { %v2687_v27 = vadd.f32 %v2279_v26, %v1171_v22  ;;  %v2151_v22 = vld [vmem:[#allocation10 + $0x34] sm:$0xf]  ;;  %v1981_v26 = vld [vmem:[#allocation10 + $0x38] sm:$0xf0] }
 0x482   :  { %v1164_v38 = vpop.f32.mrf.mxu1 }
 0x483   :  { %1181 = vadd.xlane.f32.xlu0 %v2687_v27 }
 0x484   :  { %v1092_v30 = vpop.f32.mrf.mxu0 }
 0x485   :  { %v1160_v16 = vadd.f32 %v1159_v25, %v1092_v30  ;;  %v1980_v25 = vor.u32 %v2152_v21, %v1979_v20  ;;  %v1984_v30 = vor.u32 %v2151_v22, %v1981_v26  ;;  %v2211_v21 = vld [vmem:[%s2767_s7] ss:$0 sm:$0xff] }
 0x487   :  { %v1172_v31 = vadd.f32 %v2209_v19, %v1160_v16  ;;  %1383 = vmatpush.bf16.msrb.mxu2 %v1980_v25  ;;  %v1971_v16 = vld [vmem:[#allocation10 + $0x20] sm:$0xf] }
 0x489   :  { %v2690_v33 = vadd.f32 %v2280_v32, %v1172_v31  ;;  %v2150_v31 = vld [vmem:[#allocation10 + $0x24] sm:$0xf0]  ;;  %v2149_v32 = vld [vmem:[#allocation10 + $0x24] sm:$0xf] }
 0x48b   :  { %1183 = vadd.xlane.f32.xlu1 %v2690_v33 }
 0x48c   :  { %v1095_v34 = vpop.f32.mrf.mxu0 }
 0x48d   :  { %v1163_v35 = vadd.f32 %v1162_v29, %v1095_v34  ;;  %v1972_v29 = vor.u32 %v2150_v31, %v1971_v16  ;;  %v1973_v34 = vld [vmem:[#allocation10 + $0x28] sm:$0xf0] }
 0x48f   :  { %v1173_v36 = vadd.f32 %v2209_v19, %v1163_v35  ;;  %v1976_v35 = vor.u32 %v2149_v32, %v1973_v34  ;;  %1384 = vmatpush.bf16.msrb.mxu2 %v1972_v29 }
 0x491   :  { %v2693_v24 = vadd.f32 %v2281_v37, %v1173_v36  ;;  %v1963_v36 = vld [vmem:[#allocation10 + $0x10] sm:$0xf]  ;;  %v2148_v37 = vld [vmem:[#allocation10 + $0x14] sm:$0xf0] }
 0x493   :  { %1185 = vadd.xlane.f32.xlu2 %v2693_v24 }
 0x494   :  { %v1097_v39 = vpop.f32.mrf.mxu0 }
 0x495   :  { %v1165_v28 = vadd.f32 %v1164_v38, %v1097_v39  ;;  %v2147_v38 = vld [vmem:[#allocation10 + $0x14] sm:$0xf]  ;;  %v1964_v39 = vor.u32 %v2148_v37, %v1963_v36 }
 0x497   :  { %v1174_v40 = vadd.f32 %v2209_v19, %v1165_v28  ;;  %v1992_v19 = vor.u32 %v2153_v14, %v1989_v18  ;;  %v1965_v28 = vld [vmem:[#allocation10 + $0x18] sm:$0xf0]  ;;  %1385 = vmatpush.bf16.msrb.mxu2 %v1964_v39 }
 0x499   :  { %v2696_v8 = vadd.f32 %v2282_v41, %v1174_v40  ;;  %1401 = vmatpush.bf16.msrb.mxu3 %v1992_v19  ;;  %v1968_v40 = vor.u32 %v2147_v38, %v1965_v28 }
 0x49b   :  { %1187 = vadd.xlane.f32.xlu0 %v2696_v8 }
 0x49d   :  { %1402 = vmatpush.bf16.msrb.mxu3 %v1984_v30 }
 0x4a1   :  { %1403 = vmatpush.bf16.msrb.mxu3 %v1976_v35 }
 0x4a5   :  { %1404 = vmatpush.bf16.msrb.mxu3 %v1968_v40 }
 0x4f6   :  { %v1182_v42 = vpop.xlane.xlu0 %1181 }
 0x4f7   :  { %v1189_v44 = vmul.f32 %v1182_v42, %v2580_v10 }
 0x4f9   :  { %v2701_v45 = vsub.f32 %v2687_v27, %v1189_v44  ;;  %v1955_v44 = vld [vmem:[#allocation10] sm:$0xf] }
 0x4fb   :  { %v1197_v47 = vmul.f32 %v2701_v45, %v2701_v45 }
 0x4fd   :  { %1201 = vadd.xlane.f32.xlu1 %v1197_v47  ;;  %v2146_v47 = vld [vmem:[#allocation10 + $0x4] sm:$0xf0] }
 0x4fe   :  { %v1184_v48 = vpop.xlane.xlu1 %1183 }
 0x4ff   :  { %v1190_v49 = vmul.f32 %v1184_v48, %v2580_v10  ;;  %v2145_v48 = vld [vmem:[#allocation10 + $0x4] sm:$0xf] }
 0x501   :  { %v2707_v50 = vsub.f32 %v2690_v33, %v1190_v49  ;;  %v1956_v49 = vor.u32 %v2146_v47, %v1955_v44 }
 0x503   :  { %v1198_v43 = vmul.f32 %v2707_v50, %v2707_v50  ;;  %1386 = vmatpush.bf16.msrb.mxu2 %v1956_v49  ;;  %v2176_v49 = vld [vmem:[#allocation11 + $0x78] sm:$0xff] }
 0x504   :  { %1644 = vmatpush.bf16.msra.mxu1 %v2176_v49 }
 0x505   :  { %1203 = vadd.xlane.f32.xlu2 %v1198_v43  ;;  %v1957_v43 = vld [vmem:[#allocation10 + $0x8] sm:$0xf0] }
 0x506   :  { %v1186_v46 = vpop.xlane.xlu2 %1185 }
 0x507   :  { %v1191_v51 = vmul.f32 %v1186_v46, %v2580_v10 }
 0x509   :  { %v2713_v52 = vsub.f32 %v2693_v24, %v1191_v51  ;;  %v1960_v51 = vor.u32 %v2145_v48, %v1957_v43  ;;  %v2168_v48 = vld [vmem:[#allocation11 + $0x38] sm:$0xff]  ;;  %v2167_v43 = vld [vmem:[#allocation11 + $0x30] sm:$0xff] }
 0x50a   :  { %1625 = vmatpush.bf16.msra.mxu0 %v2168_v48 }
 0x50b   :  { %v1199_v23 = vmul.f32 %v2713_v52, %v2713_v52  ;;  %1405 = vmatpush.bf16.msrb.mxu3 %v1960_v51  ;;  %v2174_v51 = vld [vmem:[#allocation11 + $0x68] sm:$0xff] }
 0x50d   :  { %1205 = vadd.xlane.f32.xlu0 %v1199_v23 }
 0x50e   :  { %v1188_v53 = vpop.xlane.xlu0 %1187  ;;  %1626 = vmatpush.bf16.msra.mxu0 %v2167_v43 }
 0x50f   :  { %v1192_v15 = vmul.f32 %v1188_v53, %v2580_v10 }
 0x511   :  { %v2719_v54 = vsub.f32 %v2696_v8, %v1192_v15 }
 0x513   :  { %v1200_v55 = vmul.f32 %v2719_v54, %v2719_v54 }
 0x515   :  { %1207 = vadd.xlane.f32.xlu1 %v1200_v55 }
 0x570   :  { %v1202_v41 = vpop.xlane.xlu1 %1201 }
 0x571   :  { %v1209_v42 = vmul.f32 %v1202_v41, %v2580_v10 }
 0x573   :  { %v1213_v46 = vadd.f32 1e-05, %v1209_v42 }
 0x575   :  { %2255 = vrsqrt.f32 %v1213_v46  ;;  %vm1223_vm15 = vweird.f32 %v1213_v46 }
 0x578   :  { %v1204_v23 = vpop.xlane.xlu2 %1203 }
 0x579   :  { %v1210_v53 = vmul.f32 %v1204_v23, %v2580_v10  ;;  %v2173_v23 = vld [vmem:[#allocation11 + $0x60] sm:$0xff] }
 0x57b   :  { %v2256_v15 = vpop.eup %2255  ;;  %v1214_v55 = vadd.f32 1e-05, %v1210_v53  ;;  %v2164_v53 = vld [vmem:[#allocation11 + $0x18] sm:$0xff] }
 0x57c   :  { %v1218_v56 = vmul.f32 %v2256_v15, %v1213_v46  ;;  %vm1224_vm14 = vweird.f32 %v2256_v15  ;;  %v2175_v46 = vld [vmem:[#allocation11 + $0x70] sm:$0xff] }
 0x57d   :  { %2257 = vrsqrt.f32 %v1214_v55  ;;  %vm1225_vm0 = vmor %vm1223_vm15, %vm1224_vm14  ;;  %vm1233_vm2 = vweird.f32 %v1214_v55  ;;  %1645 = vmatpush.bf16.msra.mxu1 %v2175_v46 }
 0x57e   :  { %v1219_v57 = vmul.f32 %v2256_v15, %v1218_v56  ;;  %v2171_v56 = vld [vmem:[#allocation11 + $0x50] sm:$0xff] }
 0x580   :  { %v1220_v59 = vmul.f32 0.5, %v1219_v57  ;;  %v1206_v60 = vpop.xlane.xlu0 %1205  ;;  %v1293_v57 = vld [vmem:[%s2769_s9] sm:$0x3] }
 0x581   :  { %v1211_v61 = vmul.f32 %v1206_v60, %v2580_v10  ;;  %1646 = vmatpush.bf16.msra.mxu1 %v2174_v51  ;;  %v2170_v60 = vld [vmem:[#allocation11 + $0x48] sm:$0xff] }
 0x582   :  { %v1221_v62 = vsub.f32 1.5, %v1220_v59  ;;  %v2162_v59 = vld [vmem:[#allocation11 + $0x8] sm:$0xff] }
 0x583   :  { %v2258_v58 = vpop.eup %2257  ;;  %v1215_v63 = vadd.f32 1e-05, %v1211_v61  ;;  %v2161_v61 = vld [vmem:[#allocation11] sm:$0xff] }
 0x584   :  { %v1222_v0 = vmul.f32 %v2256_v15, %v1221_v62  ;;  %v1228_v1 = vmul.f32 %v2258_v58, %v1214_v55  ;;  %vm1234_vm1 = vweird.f32 %v2258_v58  ;;  %v2163_v55 = vld [vmem:[#allocation11 + $0x10] sm:$0xff]  ;;  %v2169_v62 = vld [vmem:[#allocation11 + $0x40] sm:$0xff] }
 0x585   :  { %2259 = vrsqrt.f32 %v1215_v63  ;;  %vm1235_vm3 = vmor %vm1233_vm2, %vm1234_vm1  ;;  %vm1243_vm5 = vweird.f32 %v1215_v63  ;;  %1647 = vmatpush.bf16.msra.mxu1 %v2173_v23 }
 0x586   :  { %v1229_v2 = vmul.f32 %v2258_v58, %v1228_v1  ;;  %v1226_v3 = vsel %vm1225_vm0, %v2256_v15, %v1222_v0  ;;  %v2172_v15 = vld [vmem:[#allocation11 + $0x58] sm:$0xff] }
 0x587   :  { %v1257_v11 = vmul.f32 %v1226_v3, %v2701_v45 }
 0x588   :  { %v1230_v4 = vmul.f32 0.5, %v1229_v2  ;;  %v1208_v5 = vpop.xlane.xlu1 %1207 }
 0x589   :  { %v1212_v6 = vmul.f32 %v1208_v5, %v2580_v10  ;;  %v1264_v10 = vmul.f32 %v2210_v13, %v1257_v11  ;;  %1648 = vmatpush.bf16.msra.mxu1 %v2172_v15 }
 0x58a   :  { %v1231_v7 = vsub.f32 1.5, %v1230_v4 }
 0x58b   :  { %v2260_v9 = vpop.eup %2259  ;;  %v1216_v12 = vadd.f32 1e-05, %v1212_v6  ;;  %v1271_v30 = vadd.f32 %v2211_v21, %v1264_v10 }
 0x58c   :  { %v1232_v14 = vmul.f32 %v2258_v58, %v1231_v7  ;;  %v1238_v17 = vmul.f32 %v2260_v9, %v1215_v63  ;;  %vm1244_vm4 = vweird.f32 %v2260_v9  ;;  %v1296_v63 = vperm.slane %v1293_v57, 1 }
 0x58d   :  { %2261 = vrsqrt.f32 %v1216_v12  ;;  %vm1245_vm6 = vmor %vm1243_vm5, %vm1244_vm4  ;;  %vm1253_vm8 = vweird.f32 %v1216_v12  ;;  %1649 = vmatpush.bf16.msra.mxu1 %v2171_v56 }
 0x58e   :  { %v1236_v18 = vsel %vm1235_vm3, %v2258_v58, %v1232_v14  ;;  %v1239_v19 = vmul.f32 %v2260_v9, %v1238_v17  ;;  %v1295_v58 = vperm.slane %v1293_v57, 0 }
 0x58f   :  { %v1258_v20 = vmul.f32 %v1236_v18, %v2707_v50 }
 0x590   :  { %v1240_v45 = vmul.f32 0.5, %v1239_v19 }
 0x591   :  { %v1265_v22 = vmul.f32 %v2210_v13, %v1258_v20  ;;  %1650 = vmatpush.bf16.msra.mxu1 %v2170_v60 }
 0x592   :  { %v1241_v25 = vsub.f32 1.5, %v1240_v45 }
 0x593   :  { %v2262_v26 = vpop.eup %2261  ;;  %v1272_v16 = vadd.f32 %v2211_v21, %v1265_v22 }
 0x594   :  { %v1242_v31 = vmul.f32 %v2260_v9, %v1241_v25  ;;  %v1248_v32 = vmul.f32 %v2262_v26, %v1216_v12  ;;  %vm1254_vm7 = vweird.f32 %v2262_v26 }
 0x595   :  { %v1275_v29 = vpack.c.bf16 %v1272_v16, %v1271_v30  ;;  %vm1255_vm9 = vmor %vm1253_vm8, %vm1254_vm7  ;;  %1651 = vmatpush.bf16.msra.mxu1 %v2169_v62 }
 0x596   :  { %v1249_v34 = vmul.f32 %v2262_v26, %v1248_v32  ;;  %v1246_v35 = vsel %vm1245_vm6, %v2260_v9, %v1242_v31 }
 0x597   :  { %1387 = vmatmul.bf16.vlgmr.msrb.gmra.mxu2 %v1275_v29  ;;  %1406 = vmatmul.bf16.vlgmr.msrb.gmra.mxu3 %v1275_v29  ;;  %v1259_v37 = vmul.f32 %v1246_v35, %v2713_v52  ;;  %v2166_v52 = vld [vmem:[#allocation11 + $0x28] sm:$0xff] }
 0x598   :  { %v1250_v50 = vmul.f32 0.5, %v1249_v34  ;;  %1627 = vmatpush.bf16.msra.mxu0 %v2166_v52 }
 0x599   :  { %v1266_v40 = vmul.f32 %v2210_v13, %v1259_v37 }
 0x59a   :  { %v1251_v36 = vsub.f32 1.5, %v1250_v50 }
 0x59b   :  { %v1273_v42 = vadd.f32 %v2211_v21, %v1266_v40 }
 0x59c   :  { %v1252_v38 = vmul.f32 %v2262_v26, %v1251_v36 }
 0x59e   :  { %v1256_v39 = vsel %vm1255_vm9, %v2262_v26, %v1252_v38 }
 0x59f   :  { %v1260_v28 = vmul.f32 %v1256_v39, %v2719_v54  ;;  %v2165_v54 = vld [vmem:[#allocation11 + $0x20] sm:$0xff] }
 0x5a0   :  { %1628 = vmatpush.bf16.msra.mxu0 %v2165_v54 }
 0x5a1   :  { %v1267_v41 = vmul.f32 %v2210_v13, %v1260_v28 }
 0x5a3   :  { %v1274_v44 = vadd.f32 %v2211_v21, %v1267_v41 }
 0x5a4   :  { %1629 = vmatpush.bf16.msra.mxu0 %v2164_v53 }
 0x5a5   :  { %v1276_v47 = vpack.c.bf16 %v1274_v44, %v1273_v42 }
 0x5a7   :  { %1392 = vmatmul.bf16.gmra.mxu2 %v1276_v47  ;;  %1411 = vmatmul.bf16.gmra.mxu3 %v1276_v47 }
 0x5a8   :  { %1630 = vmatpush.bf16.msra.mxu0 %v2163_v55 }
 0x5ac   :  { %1631 = vmatpush.bf16.msra.mxu0 %v2162_v59 }
 0x5b0   :  { %1632 = vmatpush.bf16.msra.mxu0 %v2161_v61 }
 0x61a   :  { %v1388_v0 = vpop.f32.mrf.mxu2  ;;  %v1407_v1 = vpop.f32.mrf.mxu3 }
 0x61b   :  { %v1389_v2 = vadd.f32 %v1388_v0, %v1295_v58  ;;  %v1408_v3 = vadd.f32 %v1407_v1, %v1296_v63 }
 0x61d   :  { %v1425_v4 = vmul.f32 0.044715, %v1389_v2  ;;  %v1426_v5 = vmul.f32 0.044715, %v1408_v3  ;;  %v1417_v15 = vmul.f32 0.5, %v1389_v2  ;;  %v1418_v60 = vmul.f32 0.5, %v1408_v3 }
 0x61f   :  { %v1433_v6 = vmul.f32 %v1425_v4, %v1389_v2  ;;  %v1434_v7 = vmul.f32 %v1426_v5, %v1408_v3 }
 0x621   :  { %v1441_v9 = vmul.f32 %v1433_v6, %v1389_v2  ;;  %v1442_v11 = vmul.f32 %v1434_v7, %v1408_v3 }
 0x622   :  { %v1390_v12 = vpop.f32.mrf.mxu2  ;;  %v1409_v13 = vpop.f32.mrf.mxu3 }
 0x623   :  { %v1449_v14 = vadd.f32 %v1441_v9, %v1389_v2  ;;  %v1391_v17 = vadd.f32 %v1390_v12, %v1295_v58  ;;  %v1410_v18 = vadd.f32 %v1409_v13, %v1296_v63  ;;  %v1450_v19 = vadd.f32 %v1442_v11, %v1408_v3 }
 0x625   :  { %v1427_v20 = vmul.f32 0.044715, %v1391_v17  ;;  %v1428_v10 = vmul.f32 0.044715, %v1410_v18  ;;  %v1457_v21 = vmul.f32 0.7978846, %v1449_v14 }
 0x626   :  { %v1458_v22 = vmul.f32 0.7978846, %v1450_v19  ;;  %v1419_v57 = vmul.f32 0.5, %v1391_v17  ;;  %v1420_v61 = vmul.f32 0.5, %v1410_v18 }
 0x627   :  { %v1435_v45 = vmul.f32 %v1427_v20, %v1391_v17  ;;  %v1436_v25 = vmul.f32 %v1428_v10, %v1410_v18  ;;  %2263 = vtanh.f32 %v1457_v21 }
 0x628   :  { %2265 = vtanh.f32 %v1458_v22 }
 0x629   :  { %v1443_v26 = vmul.f32 %v1435_v45, %v1391_v17  ;;  %v1444_v30 = vmul.f32 %v1436_v25, %v1410_v18 }
 0x62a   :  { %v1393_v16 = vpop.f32.mrf.mxu2  ;;  %v1412_v31 = vpop.f32.mrf.mxu3 }
 0x62b   :  { %v1451_v32 = vadd.f32 %v1443_v26, %v1391_v17  ;;  %v1394_v29 = vadd.f32 %v1393_v16, %v1295_v58  ;;  %v2740_v34 = vadd.f32 %v1412_v31, %v1296_v63  ;;  %v1452_v50 = vadd.f32 %v1444_v30, %v1410_v18 }
 0x62d   :  { %v1459_v35 = vmul.f32 0.7978846, %v1451_v32  ;;  %v1429_v36 = vmul.f32 0.044715, %v1394_v29  ;;  %v1430_v37 = vmul.f32 0.044715, %v2740_v34  ;;  %v2264_v40 = vpop.eup %2263 }
 0x62e   :  { %v1460_v38 = vmul.f32 0.7978846, %v1452_v50  ;;  %v2266_v44 = vpop.eup %2265  ;;  %v1473_v52 = vadd.f32 1.0, %v2264_v40  ;;  %v1421_v22 = vmul.f32 0.5, %v1394_v29  ;;  %v1422_v30 = vmul.f32 0.5, %v2740_v34 }
 0x62f   :  { %2267 = vtanh.f32 %v1459_v35  ;;  %v1437_v39 = vmul.f32 %v1429_v36, %v1394_v29  ;;  %v1438_v28 = vmul.f32 %v1430_v37, %v2740_v34  ;;  %v1474_v55 = vadd.f32 1.0, %v2266_v44 }
 0x630   :  { %2269 = vtanh.f32 %v1460_v38 }
 0x631   :  { %v1445_v41 = vmul.f32 %v1437_v39, %v1394_v29  ;;  %v1446_v42 = vmul.f32 %v1438_v28, %v2740_v34  ;;  %v1482_v6 = vmul.f32 %v1474_v55, %v1418_v60  ;;  %v2212_v39 = vld [vmem:[%s2771_s11] ss:$0 sm:$0xff]  ;;  %s2474_s11 = smov [#allocation13]  }
 0x632   :  { %v1395_v47 = vpop.f32.mrf.mxu2  ;;  %v1414_v48 = vpop.f32.mrf.mxu3  ;;  %s1675_s28 = sshll.u32 %s2474_s11, 4  ;;  %s1676_s28 = int_to_ptr.vmem [resolvable:$true] %s1675_s28 }
 0x633   :  { %v1396_v49 = vadd.f32 %v1395_v47, %v1295_v58  ;;  %v1415_v43 = vadd.f32 %v1414_v48, %v1296_v63  ;;  %v1453_v46 = vadd.f32 %v1445_v41, %v1394_v29  ;;  %v1454_v51 = vadd.f32 %v1446_v42, %v2740_v34 }
 0x634   :  { %v1481_v58 = vmul.f32 %v1473_v52, %v1417_v15 }
 0x635   :  { %v2268_v54 = vpop.eup %2267  ;;  %v1431_v23 = vmul.f32 0.044715, %v1396_v49  ;;  %v1432_v53 = vmul.f32 0.044715, %v1415_v43  ;;  %v1461_v1 = vmul.f32 0.7978846, %v1453_v46 }
 0x636   :  { %v2270_v56 = vpop.eup %2269  ;;  %v1475_v59 = vadd.f32 1.0, %v2268_v54  ;;  %v1462_v5 = vmul.f32 0.7978846, %v1454_v51  ;;  %v1423_v25 = vmul.f32 0.5, %v1396_v49  ;;  %v1424_v16 = vmul.f32 0.5, %v1415_v43 }
 0x637   :  { %v1476_v62 = vadd.f32 1.0, %v2270_v56  ;;  %v1439_v0 = vmul.f32 %v1431_v23, %v1396_v49  ;;  %v1440_v4 = vmul.f32 %v1432_v53, %v1415_v43  ;;  %2271 = vtanh.f32 %v1461_v1 }
 0x638   :  { %v1483_v63 = vmul.f32 %v1475_v59, %v1419_v57  ;;  %2273 = vtanh.f32 %v1462_v5 }
 0x639   :  { %v1484_v7 = vmul.f32 %v1476_v62, %v1420_v61  ;;  %v1447_v9 = vmul.f32 %v1439_v0, %v1396_v49  ;;  %v1448_v11 = vmul.f32 %v1440_v4, %v1415_v43 }
 0x63a   :  { %v1489_v12 = vpack.c.bf16 %v1483_v63, %v1481_v58 }
 0x63b   :  { %v1490_v13 = vpack.c.bf16 %v1484_v7, %v1482_v6  ;;  %v1455_v2 = vadd.f32 %v1447_v9, %v1396_v49  ;;  %v1456_v14 = vadd.f32 %v1448_v11, %v1415_v43 }
 0x63c   :  { %1633 = vmatmul.bf16.vlgmr.msra.gmra.mxu0 %v1489_v12 }
 0x63d   :  { %1652 = vmatmul.bf16.vlgmr.msra.gmra.mxu1 %v1490_v13  ;;  %v1463_v3 = vmul.f32 0.7978846, %v1455_v2  ;;  %v1464_v17 = vmul.f32 0.7978846, %v1456_v14  ;;  %v2272_v18 = vpop.eup %2271 }
 0x63e   :  { %v2274_v19 = vpop.eup %2273  ;;  %v1477_v20 = vadd.f32 1.0, %v2272_v18 }
 0x63f   :  { %2275 = vtanh.f32 %v1463_v3  ;;  %v1478_v21 = vadd.f32 1.0, %v2274_v19 }
 0x640   :  { %2277 = vtanh.f32 %v1464_v17  ;;  %v1485_v32 = vmul.f32 %v1477_v20, %v1421_v22 }
 0x641   :  { %v1486_v35 = vmul.f32 %v1478_v21, %v1422_v30 }
 0x645   :  { %v2276_v10 = vpop.eup %2275 }
 0x646   :  { %v2278_v45 = vpop.eup %2277  ;;  %v1479_v26 = vadd.f32 1.0, %v2276_v10 }
 0x647   :  { %v1480_v31 = vadd.f32 1.0, %v2278_v45 }
 0x648   :  { %v1487_v50 = vmul.f32 %v1479_v26, %v1423_v25 }
 0x649   :  { %v1488_v36 = vmul.f32 %v1480_v31, %v1424_v16 }
 0x64a   :  { %v1491_v37 = vpack.c.bf16 %v1487_v50, %v1485_v32 }
 0x64b   :  { %v1492_v38 = vpack.c.bf16 %v1488_v36, %v1486_v35 }
 0x64c   :  { %1638 = vmatmul.bf16.gmra.mxu0 %v1491_v37 }
 0x64d   :  { %1657 = vmatmul.bf16.gmra.mxu1 %v1492_v38 }
 0x6b9   :  { %v1634_v28 = vpop.f32.mrf.mxu0 }
 0x6ba   :  { %v1635_v29 = vadd.f32 %v2212_v39, %v1634_v28  ;;  %v1653_v40 = vpop.f32.mrf.mxu1 }
 0x6bc   :  { %v1654_v41 = vadd.f32 %v1653_v40, %v1635_v29 }
 0x6be   :  { %v1663_v34 = vadd.f32 %v1654_v41, %v2687_v27 }
 0x6c0   :  { %1667 = vst [vmem:[#allocation13] sm:$0xff] %v1663_v34 }
 0x6c1   :  { %v1636_v42 = vpop.f32.mrf.mxu0 }
 0x6c2   :  { %v1637_v44 = vadd.f32 %v2212_v39, %v1636_v42  ;;  %v1655_v47 = vpop.f32.mrf.mxu1 }
 0x6c4   :  { %v1656_v48 = vadd.f32 %v1655_v47, %v1637_v44 }
 0x6c6   :  { %v1664_v49 = vadd.f32 %v1656_v48, %v2690_v33 }
 0x6c8   :  { %1668 = vst [vmem:[#allocation13 + $0x8] sm:$0xff] %v1664_v49 }
 0x6c9   :  { %v1639_v43 = vpop.f32.mrf.mxu0 }
 0x6ca   :  { %v1640_v46 = vadd.f32 %v2212_v39, %v1639_v43  ;;  %v1658_v52 = vpop.f32.mrf.mxu1 }
 0x6cc   :  { %v1659_v51 = vadd.f32 %v1658_v52, %v1640_v46 }
 0x6ce   :  { %v1665_v54 = vadd.f32 %v1659_v51, %v2693_v24 }
 0x6d0   :  { %1669 = vst [vmem:[#allocation13 + $0x10] sm:$0xff] %v1665_v54 }
 0x6d1   :  { %v1641_v23 = vpop.f32.mrf.mxu0 }
 0x6d2   :  { %v1642_v53 = vadd.f32 %v2212_v39, %v1641_v23  ;;  %v1660_v15 = vpop.f32.mrf.mxu1 }
 0x6d4   :  { %v1661_v27 = vadd.f32 %v1660_v15, %v1642_v53 }
 0x6d6   :  { %v1666_v33 = vadd.f32 %v1661_v27, %v2696_v8 }
 0x6d8   :  { %1670 = vst [vmem:[#allocation13 + $0x18] sm:$0xff] %v1666_v33 }
 0x6d9   :  { %1683 = dma.vmem_to_hbm [thread:$0]  %s1676_s28, 512, %s1678_s17, [#allocation4], %s2466_s29, %s2466_s29, %s2467_s30  }
 0x6da   :  { %2459 = dma.done.wait [#allocation4], 512  }
 0x6db   :  { %2460 = vsyncadd [#allocation4], 4294966784 }
 0x6dc   :  { %1688 = vsyncpa [#allocation3], 1 }
 0x6dd   :  { %1689 = vsyncpa [#allocation6], 1 }
 0x6de   :  { %1690 = vsyncpa [#allocation9], 1 }
 0x6df   :  { %1691 = vsyncpa [#allocation12], 1 }
 0x6e0   :  { %1692 = vsyncpa [#allocation4], 1 }

</bundles_post_ra>
